<compile_context>
chip_gen: v7x
topology: tpu7x:2x2x1
jax: 0.10.0
libtpu: 0.0.40
codegen_flags: <defaults>
</compile_context>

<pallas_src>
import functools

import jax
import jax.numpy as jnp
from jax.experimental import pallas as pl
from jax.experimental.pallas import tpu as pltpu


# ---------------------------------------------------------------------------
# Kernels
# ---------------------------------------------------------------------------
def _layer_norm(x, gamma, beta, eps=1e-5):
    mean = jnp.mean(x, axis=-1, keepdims=True)
    var = jnp.mean((x - mean) ** 2, axis=-1, keepdims=True)
    return (x - mean) * jax.lax.rsqrt(var + eps) * gamma + beta


def encoder_layer_kernel(
    x_ref, smask_ref, pmask_ref,
    wq_ref, bq_ref, wk_ref, bk_ref, wv_ref, bv_ref,
    wo_ref, bo_ref,
    ln1g_ref, ln1b_ref,
    w1_ref, b1_ref, w2_ref, b2_ref,
    ln2g_ref, ln2b_ref,
    fng_ref, fnb_ref,
    out_ref, normed_ref=None,
    *, num_heads, head_dim,
):
    # One grid step == one batch element.
    x = x_ref[0]                                   # (S, E) f32
    # Additive mask built in-kernel (no (N,S,S) HBM tensor).
    mask = smask_ref[...] + pmask_ref[0]           # (S,S) + (1,S) -> (S,S)

    H, Dh = num_heads, head_dim
    scale = 1.0 / float(Dh) ** 0.5

    # --- fused Q/K/V projections (bf16 MXU, f32 accumulation) ---------------
    xb = x.astype(jnp.bfloat16)
    q = jnp.dot(xb, wq_ref[...], preferred_element_type=jnp.float32) + bq_ref[...]
    k = jnp.dot(xb, wk_ref[...], preferred_element_type=jnp.float32) + bk_ref[...]
    v = jnp.dot(xb, wv_ref[...], preferred_element_type=jnp.float32) + bv_ref[...]
    q = q.astype(jnp.bfloat16)
    k = k.astype(jnp.bfloat16)
    v = v.astype(jnp.bfloat16)

    # --- per-head attention (only scores/ctx are per-head) ------------------
    ctx_heads = []
    for h in range(H):                             # small static unroll
        sl = slice(h * Dh, (h + 1) * Dh)
        qh, kh, vh = q[:, sl], k[:, sl], v[:, sl]
        scores = jnp.dot(qh, kh.T, preferred_element_type=jnp.float32) * scale + mask
        scores = scores - jnp.max(scores, axis=-1, keepdims=True)
        p = jnp.exp(scores)                        # f32 softmax
        p = p * pl.reciprocal(jnp.sum(p, axis=-1, keepdims=True), approx=True)
        ctx_heads.append(jnp.dot(p.astype(jnp.bfloat16), vh,
                                 preferred_element_type=jnp.float32))
    ctx = jnp.concatenate(ctx_heads, axis=-1)      # (S, E) f32

    # --- fused output projection --------------------------------------------
    attn = jnp.dot(ctx.astype(jnp.bfloat16), wo_ref[...],
                   preferred_element_type=jnp.float32) + bo_ref[...]

    src = _layer_norm(x + attn, ln1g_ref[...], ln1b_ref[...])   # residual + LN1 (f32)

    # --- feed-forward (bf16 matmuls, f32 everything else) -------------------
    ff = jnp.dot(src.astype(jnp.bfloat16), w1_ref[...],
                 preferred_element_type=jnp.float32) + b1_ref[...]
    ff = jnp.maximum(ff, 0.0)                      # ReLU (PyTorch default)
    ff = jnp.dot(ff.astype(jnp.bfloat16), w2_ref[...],
                 preferred_element_type=jnp.float32) + b2_ref[...]

    src = _layer_norm(src + ff, ln2g_ref[...], ln2b_ref[...])   # residual + LN2
    out_ref[0] = src

    # Optional fused encoder_norm output (final norm / normed hidden state).
    if normed_ref is not None:
        normed_ref[0] = _layer_norm(src, fng_ref[...], fnb_ref[...])


# ---------------------------------------------------------------------------
# Wrappers
# ---------------------------------------------------------------------------
def _full_spec(shape):
    nd = len(shape)
    return pl.BlockSpec(shape, lambda i, _nd=nd: (0,) * _nd)


def _call_encoder_layer(x, smask, pmask, params, fn_gamma, fn_beta,
                        num_heads, head_dim, emit_normed):
    N, S, E = x.shape
    kernel = functools.partial(encoder_layer_kernel,
                               num_heads=num_heads, head_dim=head_dim)

    names = ["wq", "bq", "wk", "bk", "wv", "bv", "wo", "bo",
             "ln1g", "ln1b", "w1", "b1", "w2", "b2", "ln2g", "ln2b"]
    weight_args = [params[n] for n in names] + [fn_gamma, fn_beta]

    in_specs = [
        pl.BlockSpec((1, S, E), lambda i: (i, 0, 0)),    # activations (per batch)
        pl.BlockSpec((S, S), lambda i: (0, 0)),          # additive src_mask (shared)
        pl.BlockSpec((1, 1, S), lambda i: (i, 0, 0)),    # additive padding row
    ] + [_full_spec(a.shape) for a in weight_args]

    out_shape = jax.ShapeDtypeStruct((N, S, E), jnp.float32)
    out_specs = pl.BlockSpec((1, S, E), lambda i: (i, 0, 0))
    if emit_normed:
        out_shape = (out_shape, jax.ShapeDtypeStruct((N, S, E), jnp.float32))
        out_specs = (out_specs, pl.BlockSpec((1, S, E), lambda i: (i, 0, 0)))

    return pl.pallas_call(
        kernel,
        out_shape=out_shape,
        grid=(N,),
        in_specs=in_specs,
        out_specs=out_specs,
        compiler_params=pltpu.CompilerParams(dimension_semantics=("parallel",)),
    )(x, smask, pmask, *weight_args)


class PallasTransformerEncoder:
    """JAX/Pallas equivalent of the PyTorch TransformerEncoder (eval mode)."""

    def __init__(self, d_model, nhead, dim_feedforward, num_encoder_layers, key,
                 use_encoder_norm=True, output_hidden_states=False,
                 apply_layer_norm=False):
        assert d_model % nhead == 0
        self.num_encoder_layers = num_encoder_layers
        self.output_hidden_states = output_hidden_states
        self.apply_layer_norm = apply_layer_norm
        self.nhead = nhead
        self.head_dim = d_model // nhead
        std = 0.02

        self.layers = []
        for _ in range(num_encoder_layers):
            key, *ks = jax.random.split(key, 7)
            layer = {
                # Fused, head-concatenated projection weights (bf16 storage).
                "wq": (std * jax.random.normal(ks[0], (d_model, d_model))).astype(jnp.bfloat16),
                "wk": (std * jax.random.normal(ks[1], (d_model, d_model))).astype(jnp.bfloat16),
                "wv": (std * jax.random.normal(ks[2], (d_model, d_model))).astype(jnp.bfloat16),
                "bq": jnp.zeros((1, d_model), jnp.float32),
                "bk": jnp.zeros((1, d_model), jnp.float32),
                "bv": jnp.zeros((1, d_model), jnp.float32),
                "wo": (std * jax.random.normal(ks[3], (d_model, d_model))).astype(jnp.bfloat16),
                "bo": jnp.zeros((1, d_model), jnp.float32),
                "ln1g": jnp.ones((1, d_model), jnp.float32),
                "ln1b": jnp.zeros((1, d_model), jnp.float32),
                "w1": (std * jax.random.normal(ks[4], (d_model, dim_feedforward))).astype(jnp.bfloat16),
                "b1": jnp.zeros((1, dim_feedforward), jnp.float32),
                "w2": (std * jax.random.normal(ks[5], (dim_feedforward, d_model))).astype(jnp.bfloat16),
                "b2": jnp.zeros((1, d_model), jnp.float32),
                "ln2g": jnp.ones((1, d_model), jnp.float32),
                "ln2b": jnp.zeros((1, d_model), jnp.float32),
            }
            self.layers.append(layer)

        self.encoder_norm = None
        if use_encoder_norm:
            self.encoder_norm = (jnp.ones((1, d_model), jnp.float32),
                                 jnp.zeros((1, d_model), jnp.float32))
        # Dummies so the kernel signature is uniform when encoder_norm is None.
        self._fn_dummy = (jnp.ones((1, d_model), jnp.float32),
                          jnp.zeros((1, d_model), jnp.float32))

    def __call__(self, src, src_mask=None, src_key_padding_mask=None):
        N, S, _ = src.shape

        # Shared additive (S, S) mask; boolean masks (True == disallow) -> -1e9.
        if src_mask is None:
            smask = jnp.zeros((S, S), jnp.float32)
        elif src_mask.dtype == jnp.bool_:
            smask = jnp.where(src_mask, -1e9, 0.0).astype(jnp.float32)
        else:
            smask = src_mask.astype(jnp.float32)

        # Per-batch additive padding row (N, 1, S); combined in-kernel.
        if src_key_padding_mask is None:
            pmask = jnp.zeros((N, 1, S), jnp.float32)
        else:
            pmask = jnp.where(src_key_padding_mask[:, None, :], -1e9, 0.0).astype(jnp.float32)

        fn_gamma, fn_beta = self.encoder_norm if self.encoder_norm is not None else self._fn_dummy

        hidden_states = (src,) if self.output_hidden_states else None
        n_layers = len(self.layers)
        src_normed = None
        for i, p in enumerate(self.layers):
            is_last = i == n_layers - 1
            need_norm = self.encoder_norm is not None and (
                is_last or (self.output_hidden_states and self.apply_layer_norm))
            outs = _call_encoder_layer(src, smask, pmask, p, fn_gamma, fn_beta,
                                       self.nhead, self.head_dim, need_norm)
            if need_norm:
                src, src_normed = outs
            else:
                src, src_normed = outs, None
            if self.output_hidden_states:
                if self.apply_layer_norm and self.encoder_norm is not None:
                    hidden_states += (src_normed,)
                else:
                    hidden_states += (src,)

        final = src_normed if self.encoder_norm is not None else src
        if self.output_hidden_states:
            hidden_states += (final,)
        return tuple(e for e in [final, hidden_states] if e is not None)


# ---------------------------------------------------------------------------
if __name__ == "__main__":
    # Small but lane-dense shapes: E multiple of 128 so stores are unmasked vst.
    N, S, E = 2, 16, 128          # batch, seq, embed
    NHEAD, FFN, LAYERS = 4, 256, 2

    key = jax.random.PRNGKey(0)
    key, k_src = jax.random.split(key)
    src = jax.random.normal(k_src, (N, S, E), jnp.float32)

    # Additive (S, S) mask (causal) and a boolean key-padding mask.
    src_mask = jnp.where(jnp.triu(jnp.ones((S, S), jnp.bool_), k=1), -1e9, 0.0)
    src_key_padding_mask = jnp.zeros((N, S), jnp.bool_).at[1, -2:].set(True)

    encoder = PallasTransformerEncoder(
        d_model=E, nhead=NHEAD, dim_feedforward=FFN,
        num_encoder_layers=LAYERS, key=key,
        use_encoder_norm=True, output_hidden_states=True, apply_layer_norm=False,
    )

    out = encoder(src, src_mask=src_mask, src_key_padding_mask=src_key_padding_mask)
    jax.block_until_ready(out[0])
    for h in out[1]:
        jax.block_until_ready(h)
    assert out[0].shape == (N, S, E)
    assert len(out[1]) == LAYERS + 2   # input + per-layer + final-normed
    assert bool(jnp.all(jnp.isfinite(out[0])))
    print("KERNEL_OK")
</pallas_src>

<mosaic_0001>
module attributes {stable_mosaic.version = 11 : i64} {
  func.func @encoder_layer_kernel(%arg0: i32, %arg1: memref<1x16x128xf32, #tpu.memory_space<vmem>>, %arg2: memref<16x16xf32, #tpu.memory_space<vmem>>, %arg3: memref<1x1x16xf32, #tpu.memory_space<vmem>>, %arg4: memref<128x128xbf16, #tpu.memory_space<vmem>>, %arg5: memref<1x128xf32, #tpu.memory_space<vmem>>, %arg6: memref<128x128xbf16, #tpu.memory_space<vmem>>, %arg7: memref<1x128xf32, #tpu.memory_space<vmem>>, %arg8: memref<128x128xbf16, #tpu.memory_space<vmem>>, %arg9: memref<1x128xf32, #tpu.memory_space<vmem>>, %arg10: memref<128x128xbf16, #tpu.memory_space<vmem>>, %arg11: memref<1x128xf32, #tpu.memory_space<vmem>>, %arg12: memref<1x128xf32, #tpu.memory_space<vmem>>, %arg13: memref<1x128xf32, #tpu.memory_space<vmem>>, %arg14: memref<128x256xbf16, #tpu.memory_space<vmem>>, %arg15: memref<1x256xf32, #tpu.memory_space<vmem>>, %arg16: memref<256x128xbf16, #tpu.memory_space<vmem>>, %arg17: memref<1x128xf32, #tpu.memory_space<vmem>>, %arg18: memref<1x128xf32, #tpu.memory_space<vmem>>, %arg19: memref<1x128xf32, #tpu.memory_space<vmem>>, %arg20: memref<1x128xf32, #tpu.memory_space<vmem>>, %arg21: memref<1x128xf32, #tpu.memory_space<vmem>>, %arg22: memref<1x16x128xf32, #tpu.memory_space<vmem>>) attributes {dimension_semantics = [#tpu.dimension_semantics<parallel>], iteration_bounds = array<i64: 2>, scalar_prefetch = 0 : i64, scratch_operands = 0 : i64, tpu.core_type = #tpu.core_type<tc>, window_params = [{transform_indices = @transform_0, window_bounds = array<i64: 1, 16, 128>}, {pipeline_mode = #tpu.pipeline_mode<synchronous>, transform_indices = @transform_1, window_bounds = array<i64: 16, 16>}, {transform_indices = @transform_2, window_bounds = array<i64: 1, 1, 16>}, {pipeline_mode = #tpu.pipeline_mode<synchronous>, transform_indices = @transform_3, window_bounds = array<i64: 128, 128>}, {pipeline_mode = #tpu.pipeline_mode<synchronous>, transform_indices = @transform_4, window_bounds = array<i64: 1, 128>}, {pipeline_mode = #tpu.pipeline_mode<synchronous>, transform_indices = @transform_5, window_bounds = array<i64: 128, 128>}, {pipeline_mode = #tpu.pipeline_mode<synchronous>, transform_indices = @transform_6, window_bounds = array<i64: 1, 128>}, {pipeline_mode = #tpu.pipeline_mode<synchronous>, transform_indices = @transform_7, window_bounds = array<i64: 128, 128>}, {pipeline_mode = #tpu.pipeline_mode<synchronous>, transform_indices = @transform_8, window_bounds = array<i64: 1, 128>}, {pipeline_mode = #tpu.pipeline_mode<synchronous>, transform_indices = @transform_9, window_bounds = array<i64: 128, 128>}, {pipeline_mode = #tpu.pipeline_mode<synchronous>, transform_indices = @transform_10, window_bounds = array<i64: 1, 128>}, {pipeline_mode = #tpu.pipeline_mode<synchronous>, transform_indices = @transform_11, window_bounds = array<i64: 1, 128>}, {pipeline_mode = #tpu.pipeline_mode<synchronous>, transform_indices = @transform_12, window_bounds = array<i64: 1, 128>}, {pipeline_mode = #tpu.pipeline_mode<synchronous>, transform_indices = @transform_13, window_bounds = array<i64: 128, 256>}, {pipeline_mode = #tpu.pipeline_mode<synchronous>, transform_indices = @transform_14, window_bounds = array<i64: 1, 256>}, {pipeline_mode = #tpu.pipeline_mode<synchronous>, transform_indices = @transform_15, window_bounds = array<i64: 256, 128>}, {pipeline_mode = #tpu.pipeline_mode<synchronous>, transform_indices = @transform_16, window_bounds = array<i64: 1, 128>}, {pipeline_mode = #tpu.pipeline_mode<synchronous>, transform_indices = @transform_17, window_bounds = array<i64: 1, 128>}, {pipeline_mode = #tpu.pipeline_mode<synchronous>, transform_indices = @transform_18, window_bounds = array<i64: 1, 128>}, {pipeline_mode = #tpu.pipeline_mode<synchronous>, transform_indices = @transform_19, window_bounds = array<i64: 1, 128>}, {pipeline_mode = #tpu.pipeline_mode<synchronous>, transform_indices = @transform_20, window_bounds = array<i64: 1, 128>}, {transform_indices = @transform_21, window_bounds = array<i64: 1, 16, 128>}]} {
    %c0 = arith.constant 0 : index
    %c0_0 = arith.constant 0 : index
    %c0_1 = arith.constant 0 : index
    %0 = vector.load %arg1[%c0, %c0_0, %c0_1] : memref<1x16x128xf32, #tpu.memory_space<vmem>>, vector<1x16x128xf32>
    %1 = vector.shape_cast %0 : vector<1x16x128xf32> to vector<16x128xf32>
    %c0_2 = arith.constant 0 : index
    %c0_3 = arith.constant 0 : index
    %2 = vector.load %arg2[%c0_2, %c0_3] : memref<16x16xf32, #tpu.memory_space<vmem>>, vector<16x16xf32>
    %c0_4 = arith.constant 0 : index
    %c0_5 = arith.constant 0 : index
    %c0_6 = arith.constant 0 : index
    %3 = vector.load %arg3[%c0_4, %c0_5, %c0_6] : memref<1x1x16xf32, #tpu.memory_space<vmem>>, vector<1x1x16xf32>
    %4 = vector.shape_cast %3 : vector<1x1x16xf32> to vector<1x16xf32>
    %5 = vector.broadcast %4 : vector<1x16xf32> to vector<16x16xf32>
    %6 = arith.addf %2, %5 : vector<16x16xf32>
    %7 = arith.truncf %1 : vector<16x128xf32> to vector<16x128xbf16>
    %c0_7 = arith.constant 0 : index
    %c0_8 = arith.constant 0 : index
    %8 = vector.load %arg4[%c0_7, %c0_8] : memref<128x128xbf16, #tpu.memory_space<vmem>>, vector<128x128xbf16>
    %cst = arith.constant dense<0.000000e+00> : vector<16x128xf32>
    %9 = tpu.matmul %7, %8, %cst {dimension_numbers = #tpu.dot_dimension_numbers<[1], [0], [0], [1], [0, 0, 1, 1], [], []>} : vector<16x128xbf16>, vector<128x128xbf16>, vector<16x128xf32> -> vector<16x128xf32>
    %c0_9 = arith.constant 0 : index
    %c0_10 = arith.constant 0 : index
    %10 = vector.load %arg5[%c0_9, %c0_10] : memref<1x128xf32, #tpu.memory_space<vmem>>, vector<1x128xf32>
    %11 = vector.broadcast %10 : vector<1x128xf32> to vector<16x128xf32>
    %12 = arith.addf %9, %11 : vector<16x128xf32>
    %c0_11 = arith.constant 0 : index
    %c0_12 = arith.constant 0 : index
    %13 = vector.load %arg6[%c0_11, %c0_12] : memref<128x128xbf16, #tpu.memory_space<vmem>>, vector<128x128xbf16>
    %cst_13 = arith.constant dense<0.000000e+00> : vector<16x128xf32>
    %14 = tpu.matmul %7, %13, %cst_13 {dimension_numbers = #tpu.dot_dimension_numbers<[1], [0], [0], [1], [0, 0, 1, 1], [], []>} : vector<16x128xbf16>, vector<128x128xbf16>, vector<16x128xf32> -> vector<16x128xf32>
    %c0_14 = arith.constant 0 : index
    %c0_15 = arith.constant 0 : index
    %15 = vector.load %arg7[%c0_14, %c0_15] : memref<1x128xf32, #tpu.memory_space<vmem>>, vector<1x128xf32>
    %16 = vector.broadcast %15 : vector<1x128xf32> to vector<16x128xf32>
    %17 = arith.addf %14, %16 : vector<16x128xf32>
    %c0_16 = arith.constant 0 : index
    %c0_17 = arith.constant 0 : index
    %18 = vector.load %arg8[%c0_16, %c0_17] : memref<128x128xbf16, #tpu.memory_space<vmem>>, vector<128x128xbf16>
    %cst_18 = arith.constant dense<0.000000e+00> : vector<16x128xf32>
    %19 = tpu.matmul %7, %18, %cst_18 {dimension_numbers = #tpu.dot_dimension_numbers<[1], [0], [0], [1], [0, 0, 1, 1], [], []>} : vector<16x128xbf16>, vector<128x128xbf16>, vector<16x128xf32> -> vector<16x128xf32>
    %c0_19 = arith.constant 0 : index
    %c0_20 = arith.constant 0 : index
    %20 = vector.load %arg9[%c0_19, %c0_20] : memref<1x128xf32, #tpu.memory_space<vmem>>, vector<1x128xf32>
    %21 = vector.broadcast %20 : vector<1x128xf32> to vector<16x128xf32>
    %22 = arith.addf %19, %21 : vector<16x128xf32>
    %23 = arith.truncf %12 : vector<16x128xf32> to vector<16x128xbf16>
    %24 = arith.truncf %17 : vector<16x128xf32> to vector<16x128xbf16>
    %25 = arith.truncf %22 : vector<16x128xf32> to vector<16x128xbf16>
    %26 = vector.extract_strided_slice %23 {offsets = [0, 0], sizes = [16, 32], strides = [1, 1]} : vector<16x128xbf16> to vector<16x32xbf16>
    %27 = vector.extract_strided_slice %24 {offsets = [0, 0], sizes = [16, 32], strides = [1, 1]} : vector<16x128xbf16> to vector<16x32xbf16>
    %28 = vector.extract_strided_slice %25 {offsets = [0, 0], sizes = [16, 32], strides = [1, 1]} : vector<16x128xbf16> to vector<16x32xbf16>
    %29 = tpu.transpose %27, [1, 0] : vector<16x32xbf16> -> vector<32x16xbf16>
    %cst_21 = arith.constant dense<0.000000e+00> : vector<16x16xf32>
    %30 = tpu.matmul %26, %29, %cst_21 {dimension_numbers = #tpu.dot_dimension_numbers<[1], [0], [0], [1], [0, 0, 1, 1], [], []>} : vector<16x32xbf16>, vector<32x16xbf16>, vector<16x16xf32> -> vector<16x16xf32>
    %cst_22 = arith.constant 0.176776692 : f32
    %31 = vector.broadcast %cst_22 : f32 to vector<16x16xf32>
    %32 = arith.mulf %30, %31 : vector<16x16xf32>
    %33 = arith.addf %32, %6 : vector<16x16xf32>
    %cst_23 = arith.constant dense<0xFF800000> : vector<16xf32>
    %34 = vector.multi_reduction <maximumf>, %33, %cst_23 [1] : vector<16x16xf32> to vector<16xf32>
    %35 = vector.shape_cast %34 : vector<16xf32> to vector<16x1xf32>
    %36 = vector.broadcast %35 : vector<16x1xf32> to vector<16x16xf32>
    %37 = arith.subf %33, %36 : vector<16x16xf32>
    %38 = math.exp %37 : vector<16x16xf32>
    %cst_24 = arith.constant dense<0.000000e+00> : vector<16xf32>
    %39 = vector.multi_reduction <add>, %38, %cst_24 [1] : vector<16x16xf32> to vector<16xf32>
    %40 = vector.shape_cast %39 : vector<16xf32> to vector<16x1xf32>
    %41 = tpu.reciprocal %40 {approx = true} : vector<16x1xf32> -> vector<16x1xf32>
    %42 = vector.broadcast %41 : vector<16x1xf32> to vector<16x16xf32>
    %43 = arith.mulf %38, %42 : vector<16x16xf32>
    %44 = arith.truncf %43 : vector<16x16xf32> to vector<16x16xbf16>
    %cst_25 = arith.constant dense<0.000000e+00> : vector<16x32xf32>
    %45 = tpu.matmul %44, %28, %cst_25 {dimension_numbers = #tpu.dot_dimension_numbers<[1], [0], [0], [1], [0, 0, 1, 1], [], []>} : vector<16x16xbf16>, vector<16x32xbf16>, vector<16x32xf32> -> vector<16x32xf32>
    %46 = vector.extract_strided_slice %23 {offsets = [0, 32], sizes = [16, 32], strides = [1, 1]} : vector<16x128xbf16> to vector<16x32xbf16>
    %47 = vector.extract_strided_slice %24 {offsets = [0, 32], sizes = [16, 32], strides = [1, 1]} : vector<16x128xbf16> to vector<16x32xbf16>
    %48 = vector.extract_strided_slice %25 {offsets = [0, 32], sizes = [16, 32], strides = [1, 1]} : vector<16x128xbf16> to vector<16x32xbf16>
    %49 = tpu.transpose %47, [1, 0] : vector<16x32xbf16> -> vector<32x16xbf16>
    %cst_26 = arith.constant dense<0.000000e+00> : vector<16x16xf32>
    %50 = tpu.matmul %46, %49, %cst_26 {dimension_numbers = #tpu.dot_dimension_numbers<[1], [0], [0], [1], [0, 0, 1, 1], [], []>} : vector<16x32xbf16>, vector<32x16xbf16>, vector<16x16xf32> -> vector<16x16xf32>
    %cst_27 = arith.constant 0.176776692 : f32
    %51 = vector.broadcast %cst_27 : f32 to vector<16x16xf32>
    %52 = arith.mulf %50, %51 : vector<16x16xf32>
    %53 = arith.addf %52, %6 : vector<16x16xf32>
    %cst_28 = arith.constant dense<0xFF800000> : vector<16xf32>
    %54 = vector.multi_reduction <maximumf>, %53, %cst_28 [1] : vector<16x16xf32> to vector<16xf32>
    %55 = vector.shape_cast %54 : vector<16xf32> to vector<16x1xf32>
    %56 = vector.broadcast %55 : vector<16x1xf32> to vector<16x16xf32>
    %57 = arith.subf %53, %56 : vector<16x16xf32>
    %58 = math.exp %57 : vector<16x16xf32>
    %cst_29 = arith.constant dense<0.000000e+00> : vector<16xf32>
    %59 = vector.multi_reduction <add>, %58, %cst_29 [1] : vector<16x16xf32> to vector<16xf32>
    %60 = vector.shape_cast %59 : vector<16xf32> to vector<16x1xf32>
    %61 = tpu.reciprocal %60 {approx = true} : vector<16x1xf32> -> vector<16x1xf32>
    %62 = vector.broadcast %61 : vector<16x1xf32> to vector<16x16xf32>
    %63 = arith.mulf %58, %62 : vector<16x16xf32>
    %64 = arith.truncf %63 : vector<16x16xf32> to vector<16x16xbf16>
    %cst_30 = arith.constant dense<0.000000e+00> : vector<16x32xf32>
    %65 = tpu.matmul %64, %48, %cst_30 {dimension_numbers = #tpu.dot_dimension_numbers<[1], [0], [0], [1], [0, 0, 1, 1], [], []>} : vector<16x16xbf16>, vector<16x32xbf16>, vector<16x32xf32> -> vector<16x32xf32>
    %66 = vector.extract_strided_slice %23 {offsets = [0, 64], sizes = [16, 32], strides = [1, 1]} : vector<16x128xbf16> to vector<16x32xbf16>
    %67 = vector.extract_strided_slice %24 {offsets = [0, 64], sizes = [16, 32], strides = [1, 1]} : vector<16x128xbf16> to vector<16x32xbf16>
    %68 = vector.extract_strided_slice %25 {offsets = [0, 64], sizes = [16, 32], strides = [1, 1]} : vector<16x128xbf16> to vector<16x32xbf16>
    %69 = tpu.transpose %67, [1, 0] : vector<16x32xbf16> -> vector<32x16xbf16>
    %cst_31 = arith.constant dense<0.000000e+00> : vector<16x16xf32>
    %70 = tpu.matmul %66, %69, %cst_31 {dimension_numbers = #tpu.dot_dimension_numbers<[1], [0], [0], [1], [0, 0, 1, 1], [], []>} : vector<16x32xbf16>, vector<32x16xbf16>, vector<16x16xf32> -> vector<16x16xf32>
    %cst_32 = arith.constant 0.176776692 : f32
    %71 = vector.broadcast %cst_32 : f32 to vector<16x16xf32>
    %72 = arith.mulf %70, %71 : vector<16x16xf32>
    %73 = arith.addf %72, %6 : vector<16x16xf32>
    %cst_33 = arith.constant dense<0xFF800000> : vector<16xf32>
    %74 = vector.multi_reduction <maximumf>, %73, %cst_33 [1] : vector<16x16xf32> to vector<16xf32>
    %75 = vector.shape_cast %74 : vector<16xf32> to vector<16x1xf32>
    %76 = vector.broadcast %75 : vector<16x1xf32> to vector<16x16xf32>
    %77 = arith.subf %73, %76 : vector<16x16xf32>
    %78 = math.exp %77 : vector<16x16xf32>
    %cst_34 = arith.constant dense<0.000000e+00> : vector<16xf32>
    %79 = vector.multi_reduction <add>, %78, %cst_34 [1] : vector<16x16xf32> to vector<16xf32>
    %80 = vector.shape_cast %79 : vector<16xf32> to vector<16x1xf32>
    %81 = tpu.reciprocal %80 {approx = true} : vector<16x1xf32> -> vector<16x1xf32>
    %82 = vector.broadcast %81 : vector<16x1xf32> to vector<16x16xf32>
    %83 = arith.mulf %78, %82 : vector<16x16xf32>
    %84 = arith.truncf %83 : vector<16x16xf32> to vector<16x16xbf16>
    %cst_35 = arith.constant dense<0.000000e+00> : vector<16x32xf32>
    %85 = tpu.matmul %84, %68, %cst_35 {dimension_numbers = #tpu.dot_dimension_numbers<[1], [0], [0], [1], [0, 0, 1, 1], [], []>} : vector<16x16xbf16>, vector<16x32xbf16>, vector<16x32xf32> -> vector<16x32xf32>
    %86 = vector.extract_strided_slice %23 {offsets = [0, 96], sizes = [16, 32], strides = [1, 1]} : vector<16x128xbf16> to vector<16x32xbf16>
    %87 = vector.extract_strided_slice %24 {offsets = [0, 96], sizes = [16, 32], strides = [1, 1]} : vector<16x128xbf16> to vector<16x32xbf16>
    %88 = vector.extract_strided_slice %25 {offsets = [0, 96], sizes = [16, 32], strides = [1, 1]} : vector<16x128xbf16> to vector<16x32xbf16>
    %89 = tpu.transpose %87, [1, 0] : vector<16x32xbf16> -> vector<32x16xbf16>
    %cst_36 = arith.constant dense<0.000000e+00> : vector<16x16xf32>
    %90 = tpu.matmul %86, %89, %cst_36 {dimension_numbers = #tpu.dot_dimension_numbers<[1], [0], [0], [1], [0, 0, 1, 1], [], []>} : vector<16x32xbf16>, vector<32x16xbf16>, vector<16x16xf32> -> vector<16x16xf32>
    %cst_37 = arith.constant 0.176776692 : f32
    %91 = vector.broadcast %cst_37 : f32 to vector<16x16xf32>
    %92 = arith.mulf %90, %91 : vector<16x16xf32>
    %93 = arith.addf %92, %6 : vector<16x16xf32>
    %cst_38 = arith.constant dense<0xFF800000> : vector<16xf32>
    %94 = vector.multi_reduction <maximumf>, %93, %cst_38 [1] : vector<16x16xf32> to vector<16xf32>
    %95 = vector.shape_cast %94 : vector<16xf32> to vector<16x1xf32>
    %96 = vector.broadcast %95 : vector<16x1xf32> to vector<16x16xf32>
    %97 = arith.subf %93, %96 : vector<16x16xf32>
    %98 = math.exp %97 : vector<16x16xf32>
    %cst_39 = arith.constant dense<0.000000e+00> : vector<16xf32>
    %99 = vector.multi_reduction <add>, %98, %cst_39 [1] : vector<16x16xf32> to vector<16xf32>
    %100 = vector.shape_cast %99 : vector<16xf32> to vector<16x1xf32>
    %101 = tpu.reciprocal %100 {approx = true} : vector<16x1xf32> -> vector<16x1xf32>
    %102 = vector.broadcast %101 : vector<16x1xf32> to vector<16x16xf32>
    %103 = arith.mulf %98, %102 : vector<16x16xf32>
    %104 = arith.truncf %103 : vector<16x16xf32> to vector<16x16xbf16>
    %cst_40 = arith.constant dense<0.000000e+00> : vector<16x32xf32>
    %105 = tpu.matmul %104, %88, %cst_40 {dimension_numbers = #tpu.dot_dimension_numbers<[1], [0], [0], [1], [0, 0, 1, 1], [], []>} : vector<16x16xbf16>, vector<16x32xbf16>, vector<16x32xf32> -> vector<16x32xf32>
    %106 = tpu.concatenate %45, %65, %85, %105 in 1 : vector<16x32xf32>, vector<16x32xf32>, vector<16x32xf32>, vector<16x32xf32> -> vector<16x128xf32>
    %107 = arith.truncf %106 : vector<16x128xf32> to vector<16x128xbf16>
    %c0_41 = arith.constant 0 : index
    %c0_42 = arith.constant 0 : index
    %108 = vector.load %arg10[%c0_41, %c0_42] : memref<128x128xbf16, #tpu.memory_space<vmem>>, vector<128x128xbf16>
    %cst_43 = arith.constant dense<0.000000e+00> : vector<16x128xf32>
    %109 = tpu.matmul %107, %108, %cst_43 {dimension_numbers = #tpu.dot_dimension_numbers<[1], [0], [0], [1], [0, 0, 1, 1], [], []>} : vector<16x128xbf16>, vector<128x128xbf16>, vector<16x128xf32> -> vector<16x128xf32>
    %c0_44 = arith.constant 0 : index
    %c0_45 = arith.constant 0 : index
    %110 = vector.load %arg11[%c0_44, %c0_45] : memref<1x128xf32, #tpu.memory_space<vmem>>, vector<1x128xf32>
    %111 = vector.broadcast %110 : vector<1x128xf32> to vector<16x128xf32>
    %112 = arith.addf %109, %111 : vector<16x128xf32>
    %113 = arith.addf %1, %112 : vector<16x128xf32>
    %c0_46 = arith.constant 0 : index
    %c0_47 = arith.constant 0 : index
    %114 = vector.load %arg12[%c0_46, %c0_47] : memref<1x128xf32, #tpu.memory_space<vmem>>, vector<1x128xf32>
    %c0_48 = arith.constant 0 : index
    %c0_49 = arith.constant 0 : index
    %115 = vector.load %arg13[%c0_48, %c0_49] : memref<1x128xf32, #tpu.memory_space<vmem>>, vector<1x128xf32>
    %cst_50 = arith.constant dense<0.000000e+00> : vector<16xf32>
    %116 = vector.multi_reduction <add>, %113, %cst_50 [1] : vector<16x128xf32> to vector<16xf32>
    %117 = vector.shape_cast %116 : vector<16xf32> to vector<16x1xf32>
    %cst_51 = arith.constant 1.280000e+02 : f32
    %118 = vector.broadcast %cst_51 : f32 to vector<16x1xf32>
    %119 = arith.divf %117, %118 : vector<16x1xf32>
    %120 = vector.broadcast %119 : vector<16x1xf32> to vector<16x128xf32>
    %121 = arith.subf %113, %120 : vector<16x128xf32>
    %122 = arith.mulf %121, %121 : vector<16x128xf32>
    %cst_52 = arith.constant dense<0.000000e+00> : vector<16xf32>
    %123 = vector.multi_reduction <add>, %122, %cst_52 [1] : vector<16x128xf32> to vector<16xf32>
    %124 = vector.shape_cast %123 : vector<16xf32> to vector<16x1xf32>
    %cst_53 = arith.constant 1.280000e+02 : f32
    %125 = vector.broadcast %cst_53 : f32 to vector<16x1xf32>
    %126 = arith.divf %124, %125 : vector<16x1xf32>
    %127 = vector.broadcast %119 : vector<16x1xf32> to vector<16x128xf32>
    %128 = arith.subf %113, %127 : vector<16x128xf32>
    %cst_54 = arith.constant 9.99999974E-6 : f32
    %129 = vector.broadcast %cst_54 : f32 to vector<16x1xf32>
    %130 = arith.addf %126, %129 : vector<16x1xf32>
    %131 = math.rsqrt %130 : vector<16x1xf32>
    %132 = vector.broadcast %131 : vector<16x1xf32> to vector<16x128xf32>
    %133 = arith.mulf %128, %132 : vector<16x128xf32>
    %134 = vector.broadcast %114 : vector<1x128xf32> to vector<16x128xf32>
    %135 = arith.mulf %133, %134 : vector<16x128xf32>
    %136 = vector.broadcast %115 : vector<1x128xf32> to vector<16x128xf32>
    %137 = arith.addf %135, %136 : vector<16x128xf32>
    %138 = arith.truncf %137 : vector<16x128xf32> to vector<16x128xbf16>
    %c0_55 = arith.constant 0 : index
    %c0_56 = arith.constant 0 : index
    %139 = vector.load %arg14[%c0_55, %c0_56] : memref<128x256xbf16, #tpu.memory_space<vmem>>, vector<128x256xbf16>
    %cst_57 = arith.constant dense<0.000000e+00> : vector<16x256xf32>
    %140 = tpu.matmul %138, %139, %cst_57 {dimension_numbers = #tpu.dot_dimension_numbers<[1], [0], [0], [1], [0, 0, 1, 1], [], []>} : vector<16x128xbf16>, vector<128x256xbf16>, vector<16x256xf32> -> vector<16x256xf32>
    %c0_58 = arith.constant 0 : index
    %c0_59 = arith.constant 0 : index
    %141 = vector.load %arg15[%c0_58, %c0_59] : memref<1x256xf32, #tpu.memory_space<vmem>>, vector<1x256xf32>
    %142 = vector.broadcast %141 : vector<1x256xf32> to vector<16x256xf32>
    %143 = arith.addf %140, %142 : vector<16x256xf32>
    %cst_60 = arith.constant 0.000000e+00 : f32
    %144 = vector.broadcast %cst_60 : f32 to vector<16x256xf32>
    %145 = arith.maximumf %143, %144 : vector<16x256xf32>
    %146 = arith.truncf %145 : vector<16x256xf32> to vector<16x256xbf16>
    %c0_61 = arith.constant 0 : index
    %c0_62 = arith.constant 0 : index
    %147 = vector.load %arg16[%c0_61, %c0_62] : memref<256x128xbf16, #tpu.memory_space<vmem>>, vector<256x128xbf16>
    %cst_63 = arith.constant dense<0.000000e+00> : vector<16x128xf32>
    %148 = tpu.matmul %146, %147, %cst_63 {dimension_numbers = #tpu.dot_dimension_numbers<[1], [0], [0], [1], [0, 0, 1, 1], [], []>} : vector<16x256xbf16>, vector<256x128xbf16>, vector<16x128xf32> -> vector<16x128xf32>
    %c0_64 = arith.constant 0 : index
    %c0_65 = arith.constant 0 : index
    %149 = vector.load %arg17[%c0_64, %c0_65] : memref<1x128xf32, #tpu.memory_space<vmem>>, vector<1x128xf32>
    %150 = vector.broadcast %149 : vector<1x128xf32> to vector<16x128xf32>
    %151 = arith.addf %148, %150 : vector<16x128xf32>
    %152 = arith.addf %137, %151 : vector<16x128xf32>
    %c0_66 = arith.constant 0 : index
    %c0_67 = arith.constant 0 : index
    %153 = vector.load %arg18[%c0_66, %c0_67] : memref<1x128xf32, #tpu.memory_space<vmem>>, vector<1x128xf32>
    %c0_68 = arith.constant 0 : index
    %c0_69 = arith.constant 0 : index
    %154 = vector.load %arg19[%c0_68, %c0_69] : memref<1x128xf32, #tpu.memory_space<vmem>>, vector<1x128xf32>
    %cst_70 = arith.constant dense<0.000000e+00> : vector<16xf32>
    %155 = vector.multi_reduction <add>, %152, %cst_70 [1] : vector<16x128xf32> to vector<16xf32>
    %156 = vector.shape_cast %155 : vector<16xf32> to vector<16x1xf32>
    %cst_71 = arith.constant 1.280000e+02 : f32
    %157 = vector.broadcast %cst_71 : f32 to vector<16x1xf32>
    %158 = arith.divf %156, %157 : vector<16x1xf32>
    %159 = vector.broadcast %158 : vector<16x1xf32> to vector<16x128xf32>
    %160 = arith.subf %152, %159 : vector<16x128xf32>
    %161 = arith.mulf %160, %160 : vector<16x128xf32>
    %cst_72 = arith.constant dense<0.000000e+00> : vector<16xf32>
    %162 = vector.multi_reduction <add>, %161, %cst_72 [1] : vector<16x128xf32> to vector<16xf32>
    %163 = vector.shape_cast %162 : vector<16xf32> to vector<16x1xf32>
    %cst_73 = arith.constant 1.280000e+02 : f32
    %164 = vector.broadcast %cst_73 : f32 to vector<16x1xf32>
    %165 = arith.divf %163, %164 : vector<16x1xf32>
    %166 = vector.broadcast %158 : vector<16x1xf32> to vector<16x128xf32>
    %167 = arith.subf %152, %166 : vector<16x128xf32>
    %cst_74 = arith.constant 9.99999974E-6 : f32
    %168 = vector.broadcast %cst_74 : f32 to vector<16x1xf32>
    %169 = arith.addf %165, %168 : vector<16x1xf32>
    %170 = math.rsqrt %169 : vector<16x1xf32>
    %171 = vector.broadcast %170 : vector<16x1xf32> to vector<16x128xf32>
    %172 = arith.mulf %167, %171 : vector<16x128xf32>
    %173 = vector.broadcast %153 : vector<1x128xf32> to vector<16x128xf32>
    %174 = arith.mulf %172, %173 : vector<16x128xf32>
    %175 = vector.broadcast %154 : vector<1x128xf32> to vector<16x128xf32>
    %176 = arith.addf %174, %175 : vector<16x128xf32>
    %c0_75 = arith.constant 0 : index
    %c0_76 = arith.constant 0 : index
    %c0_77 = arith.constant 0 : index
    %177 = vector.load %arg22[%c0_75, %c0_76, %c0_77] : memref<1x16x128xf32, #tpu.memory_space<vmem>>, vector<1x16x128xf32>
    %178 = vector.shape_cast %177 : vector<1x16x128xf32> to vector<16x128xf32>
    %179 = vector.shape_cast %176 : vector<16x128xf32> to vector<1x16x128xf32>
    tpu.vector_store %arg22[%c0_75, %c0_76, %c0_77], %179 {strides = array<i32>} : memref<1x16x128xf32, #tpu.memory_space<vmem>>, vector<1x16x128xf32>,
    return
  }
  func.func @transform_0(%arg0: i32) -> (i32, i32, i32) {
    %c0_i32 = arith.constant 0 : i32
    %c0_i32_0 = arith.constant 0 : i32
    %c0_i32_1 = arith.constant 0 : i32
    return %arg0, %c0_i32, %c0_i32_0 : i32, i32, i32
  }
  func.func @transform_1(%arg0: i32) -> (i32, i32) {
    %c0_i32 = arith.constant 0 : i32
    %c0_i32_0 = arith.constant 0 : i32
    %c0_i32_1 = arith.constant 0 : i32
    return %c0_i32, %c0_i32_0 : i32, i32
  }
  func.func @transform_2(%arg0: i32) -> (i32, i32, i32) {
    %c0_i32 = arith.constant 0 : i32
    %c0_i32_0 = arith.constant 0 : i32
    %c0_i32_1 = arith.constant 0 : i32
    return %arg0, %c0_i32, %c0_i32_0 : i32, i32, i32
  }
  func.func @transform_3(%arg0: i32) -> (i32, i32) {
    %c0_i32 = arith.constant 0 : i32
    %c0_i32_0 = arith.constant 0 : i32
    %c0_i32_1 = arith.constant 0 : i32
    return %c0_i32, %c0_i32_0 : i32, i32
  }
  func.func @transform_4(%arg0: i32) -> (i32, i32) {
    %c0_i32 = arith.constant 0 : i32
    %c0_i32_0 = arith.constant 0 : i32
    %c0_i32_1 = arith.constant 0 : i32
    return %c0_i32, %c0_i32_0 : i32, i32
  }
  func.func @transform_5(%arg0: i32) -> (i32, i32) {
    %c0_i32 = arith.constant 0 : i32
    %c0_i32_0 = arith.constant 0 : i32
    %c0_i32_1 = arith.constant 0 : i32
    return %c0_i32, %c0_i32_0 : i32, i32
  }
  func.func @transform_6(%arg0: i32) -> (i32, i32) {
    %c0_i32 = arith.constant 0 : i32
    %c0_i32_0 = arith.constant 0 : i32
    %c0_i32_1 = arith.constant 0 : i32
    return %c0_i32, %c0_i32_0 : i32, i32
  }
  func.func @transform_7(%arg0: i32) -> (i32, i32) {
    %c0_i32 = arith.constant 0 : i32
    %c0_i32_0 = arith.constant 0 : i32
    %c0_i32_1 = arith.constant 0 : i32
    return %c0_i32, %c0_i32_0 : i32, i32
  }
  func.func @transform_8(%arg0: i32) -> (i32, i32) {
    %c0_i32 = arith.constant 0 : i32
    %c0_i32_0 = arith.constant 0 : i32
    %c0_i32_1 = arith.constant 0 : i32
    return %c0_i32, %c0_i32_0 : i32, i32
  }
  func.func @transform_9(%arg0: i32) -> (i32, i32) {
    %c0_i32 = arith.constant 0 : i32
    %c0_i32_0 = arith.constant 0 : i32
    %c0_i32_1 = arith.constant 0 : i32
    return %c0_i32, %c0_i32_0 : i32, i32
  }
  func.func @transform_10(%arg0: i32) -> (i32, i32) {
    %c0_i32 = arith.constant 0 : i32
    %c0_i32_0 = arith.constant 0 : i32
    %c0_i32_1 = arith.constant 0 : i32
    return %c0_i32, %c0_i32_0 : i32, i32
  }
  func.func @transform_11(%arg0: i32) -> (i32, i32) {
    %c0_i32 = arith.constant 0 : i32
    %c0_i32_0 = arith.constant 0 : i32
    %c0_i32_1 = arith.constant 0 : i32
    return %c0_i32, %c0_i32_0 : i32, i32
  }
  func.func @transform_12(%arg0: i32) -> (i32, i32) {
    %c0_i32 = arith.constant 0 : i32
    %c0_i32_0 = arith.constant 0 : i32
    %c0_i32_1 = arith.constant 0 : i32
    return %c0_i32, %c0_i32_0 : i32, i32
  }
  func.func @transform_13(%arg0: i32) -> (i32, i32) {
    %c0_i32 = arith.constant 0 : i32
    %c0_i32_0 = arith.constant 0 : i32
    %c0_i32_1 = arith.constant 0 : i32
    return %c0_i32, %c0_i32_0 : i32, i32
  }
  func.func @transform_14(%arg0: i32) -> (i32, i32) {
    %c0_i32 = arith.constant 0 : i32
    %c0_i32_0 = arith.constant 0 : i32
    %c0_i32_1 = arith.constant 0 : i32
    return %c0_i32, %c0_i32_0 : i32, i32
  }
  func.func @transform_15(%arg0: i32) -> (i32, i32) {
    %c0_i32 = arith.constant 0 : i32
    %c0_i32_0 = arith.constant 0 : i32
    %c0_i32_1 = arith.constant 0 : i32
    return %c0_i32, %c0_i32_0 : i32, i32
  }
  func.func @transform_16(%arg0: i32) -> (i32, i32) {
    %c0_i32 = arith.constant 0 : i32
    %c0_i32_0 = arith.constant 0 : i32
    %c0_i32_1 = arith.constant 0 : i32
    return %c0_i32, %c0_i32_0 : i32, i32
  }
  func.func @transform_17(%arg0: i32) -> (i32, i32) {
    %c0_i32 = arith.constant 0 : i32
    %c0_i32_0 = arith.constant 0 : i32
    %c0_i32_1 = arith.constant 0 : i32
    return %c0_i32, %c0_i32_0 : i32, i32
  }
  func.func @transform_18(%arg0: i32) -> (i32, i32) {
    %c0_i32 = arith.constant 0 : i32
    %c0_i32_0 = arith.constant 0 : i32
    %c0_i32_1 = arith.constant 0 : i32
    return %c0_i32, %c0_i32_0 : i32, i32
  }
  func.func @transform_19(%arg0: i32) -> (i32, i32) {
    %c0_i32 = arith.constant 0 : i32
    %c0_i32_0 = arith.constant 0 : i32
    %c0_i32_1 = arith.constant 0 : i32
    return %c0_i32, %c0_i32_0 : i32, i32
  }
  func.func @transform_20(%arg0: i32) -> (i32, i32) {
    %c0_i32 = arith.constant 0 : i32
    %c0_i32_0 = arith.constant 0 : i32
    %c0_i32_1 = arith.constant 0 : i32
    return %c0_i32, %c0_i32_0 : i32, i32
  }
  func.func @transform_21(%arg0: i32) -> (i32, i32, i32) {
    %c0_i32 = arith.constant 0 : i32
    %c0_i32_0 = arith.constant 0 : i32
    %c0_i32_1 = arith.constant 0 : i32
    return %arg0, %c0_i32, %c0_i32_0 : i32, i32, i32
  }
}

</mosaic_0001>

<bundles_post_ra>
// kernel: tpu_custom_call.1
= control target key start
LH: loop header
LB: loop body
LE: loop exit
PB: predicated region body
PF: predicated region fallthrough
CT: control target
= control target key end

     0   :  { %s3956_s0 = inlined_call_operand.hbm [shape: f32[2,16,128], index: 0, kind: input, shape index: {}]   ;;  %s3957_s1 = inlined_call_operand.hbm [shape: f32[16,16], index: 1, kind: input, shape index: {}]   ;;  %s3958_s2 = inlined_call_operand.vmem [shape: f32[2,1,16], index: 2, kind: input, shape index: {}]   ;;  %s3959_s3 = inlined_call_operand.hbm [shape: bf16[128,128], index: 3, kind: input, shape index: {}]   ;;  %s3960_s4 = inlined_call_operand.vmem [shape: f32[1,128], index: 4, kind: input, shape index: {}]   ;;  %s3961_s5 = inlined_call_operand.hbm [shape: bf16[128,128], index: 5, kind: input, shape index: {}]   ;;  %s3962_s6 = inlined_call_operand.vmem [shape: f32[1,128], index: 6, kind: input, shape index: {}]   ;;  %s3963_s7 = inlined_call_operand.hbm [shape: bf16[128,128], index: 7, kind: input, shape index: {}]   ;;  %s3964_s8 = inlined_call_operand.vmem [shape: f32[1,128], index: 8, kind: input, shape index: {}]   ;;  %s3965_s9 = inlined_call_operand.hbm [shape: bf16[128,128], index: 9, kind: input, shape index: {}]   ;;  %s3966_s10 = inlined_call_operand.vmem [shape: f32[1,128], index: 10, kind: input, shape index: {}]   ;;  %s3967_s11 = inlined_call_operand.vmem [shape: f32[1,128], index: 11, kind: input, shape index: {}]   ;;  %s3968_s12 = inlined_call_operand.vmem [shape: f32[1,128], index: 12, kind: input, shape index: {}]   ;;  %s3969_s13 = inlined_call_operand.hbm [shape: bf16[128,256], index: 13, kind: input, shape index: {}]   ;;  %s3970_s14 = inlined_call_operand.vmem [shape: f32[1,256], index: 14, kind: input, shape index: {}]   ;;  %s3971_s15 = inlined_call_operand.hbm [shape: bf16[256,128], index: 15, kind: input, shape index: {}]   ;;  %s3972_s16 = inlined_call_operand.vmem [shape: f32[1,128], index: 16, kind: input, shape index: {}]   ;;  %s3973_s17 = inlined_call_operand.vmem [shape: f32[1,128], index: 17, kind: input, shape index: {}]   ;;  %s3974_s18 = inlined_call_operand.vmem [shape: f32[1,128], index: 18, kind: input, shape index: {}]   ;;  %s3975_s19 = inlined_call_operand.vmem [shape: f32[1,128], index: 19, kind: input, shape index: {}]   ;;  %s3976_s20 = inlined_call_operand.vmem [shape: f32[1,128], index: 20, kind: input, shape index: {}]   ;;  %s3977_s21 = inlined_call_operand.hbm [shape: f32[2,16,128], index: 21, kind: output, shape index: {}]  }
   0x1   :  { %3992 = sst [smem:[#allocation23_spill]] %s3956_s0 }
   0x2   :  { %3993 = sst [smem:[#allocation24_spill]] %s3957_s1 }
   0x3   :  { %3994 = sst [smem:[#allocation25_spill]] %s3958_s2 }
   0x4   :  { %3995 = sst [smem:[#allocation26_spill]] %s3959_s3 }
   0x5   :  { %3996 = sst [smem:[#allocation27_spill]] %s3960_s4 }
   0x6   :  { %3997 = sst [smem:[#allocation28_spill]] %s3961_s5 }
   0x7   :  { %3998 = sst [smem:[#allocation29_spill]] %s3963_s7 }
   0x8   :  { %3999 = sst [smem:[#allocation30_spill]] %s3965_s9 }
   0x9   :  { %4000 = sst [smem:[#allocation31_spill]] %s3967_s11 }
   0xa   :  { %4001 = sst [smem:[#allocation32_spill]] %s3968_s12 }
   0xb   :  { %4002 = sst [smem:[#allocation33_spill]] %s3970_s14 }
   0xc   :  { %4003 = sst [smem:[#allocation34_spill]] %s3972_s16 }
   0xd   :  { %4004 = sst [smem:[#allocation35_spill]] %s3973_s17 }
   0xe   :  { %4005 = sst [smem:[#allocation36_spill]] %s3974_s18 }
   0xf   :  { %4006 = sst [smem:[#allocation37_spill]] %s3977_s21 }
  0x10   :  { %26 = vsyncpa [#allocation3], 0 }
  0x11   :  { %28 = vsyncpa [#allocation3 + $0x1], 0 }
  0x12   :  { %29 = vsyncpa [#allocation6], 0 }
  0x13   :  { %30 = vsyncpa [#allocation9], 0 }
  0x14   :  { %31 = vsyncpa [#allocation12], 0 }
  0x15   :  { %32 = vsyncpa [#allocation15], 0 }
  0x16   :  { %33 = vsyncpa [#allocation4], 0 }
  0x17   :  { %35 = vsyncpa [#allocation4 + $0x1], 0  ;;  %s3383_s2 = smov 0   ;;  %s3385_s25 = smov 0  }
  0x18   :  { %s3387_s26 = smov 0   ;;  %s3389_s19 = smov 0  }
  0x19 LB: > { %s3252_s20 = smov [#allocation5]   ;;  %s3404_s3 = sadd.s32 4294967295, %s3250_s19   ;;  %s3250_s19 = sphi %s3389_s19, %s4047_s19   ;;  %s3246_s26 = sphi %s3387_s26, %s4046_s26   ;;  %s3242_s25 = sphi %s3385_s25, %s4045_s25   ;;  %s3238_s2 = sphi %s3383_s2, %s4044_s2  }
  0x1a   : > { %s535_s27 = sshll.u32 %s3252_s20, 4  ;;  %p2373_p0 = scmp.ge.s32.totalorder %s3250_s19, 1  ;;  %s3409_s27 = int_to_ptr.vmem [resolvable:$true] %s535_s27 }
  0x1b   : > { %p3985_p1 = scmp.eq.s32.totalorder %s3404_s3, 0  ;;  %p523_p2 = scmp.lt.s32.totalorder %s3250_s19, 3 }
  0x1c   : > { %s3253_s0 = smov [#allocation8]   ;;  %s3254_s30 = smov [#allocation11]  }
  0x1d   : > { %p3411_p3 = pnand %p2373_p0, %p523_p2  ;;  %s564_s4 = sshll.u32 %s3253_s0, 4  ;;  %s3424_s4 = int_to_ptr.vmem [resolvable:$true] %s564_s4 }
  0x1e   : > { %s3426_s5 = sshll.u32 %s3254_s30, 4  ;;  %s4009_s1 = sld [smem:[#allocation24_spill]]  ;;  %s597_s5 = int_to_ptr.vmem [resolvable:$true] %s3426_s5 }
  0x1f   : > { %s4007_s28 = scalar_select %p3411_p3, 1, 0 }
  0x20   : > { %p2718_p5 = pneg %p3411_p3 }
  0x22   : > { %p3420_p6 = pnand %p2718_p5, %p3985_p1 }
  0x24   : > { %s2942_s24 = scalar_lea.hbm %s4009_s1, 256  ;;  %p3436_p8 = pneg %p3420_p6 }
  0x25   : > { %p2943_p7 = scmp.ne.s32.totalorder %s4009_s1, %s2942_s24  ;;  %p2949_p11 = scmp.lt.u32.totalorder %s2942_s24, %s4009_s1 }
  0x27   : > { %p2945_p9 = pnand %p3436_p8, %p2943_p7 }
  0x29   : > { %p2946_p10 = pneg %p2945_p9 }
  0x2b   : > { %p2951_p12 = pnand %p2949_p11, %p2946_p10 }
  0x2d   : > { %2954 = shalt.err (!%p2951_p12)
}
  0x2e   : > { %s2955_s21 = scalar_lea.vmem %s3409_s27, 256  ;;  %p2963_p5 = scmp.lt.s32.totalorder %s3409_s27, %s3409_s27 }
  0x2f   : > { %p2956_p13 = scmp.ne.s32.totalorder %s3409_s27, %s2955_s21  ;;  %p2964_p4 = scmp.lt.s32.totalorder %s2955_s21, %s2955_s21 }
  0x31   : > { %p2958_p0 = pnand %p2956_p13, %p3436_p8  ;;  %p2965_p7 = por %p2964_p4, %p2963_p5 }
  0x33   : > { %p2959_p2 = pneg %p2958_p0 }
  0x35   : > { %p2966_p9 = pnand %p2965_p7, %p2959_p2 }
  0x37   : > { %2969 = shalt.err (!%p2966_p9)
}
  0x38   : > { %s3983_s22 = smov 128   ;;  %s3987_s23 = smov 8  }
  0x39   : > { %2721 = dma.hbm_to_vmem [thread:$0]  (!%p3420_p6), %s4009_s1, 256, %s3409_s27, [#allocation6], %s3983_s22, %s3983_s22, %s3987_s23  }
  0x3a   : > { %s4011_s17 = sld [smem:[#allocation28_spill]] }
  0x40   : > { %s2970_s21 = scalar_lea.hbm %s4011_s17, 1024 }
  0x41   : > { %p2971_p4 = scmp.ne.s32.totalorder %s4011_s17, %s2970_s21  ;;  %p2977_p12 = scmp.lt.u32.totalorder %s2970_s21, %s4011_s17 }
  0x43   : > { %p2973_p10 = pnand %p2971_p4, %p3436_p8 }
  0x45   : > { %p2974_p11 = pneg %p2973_p10 }
  0x47   : > { %p2979_p13 = pnand %p2977_p12, %p2974_p11 }
  0x49   : > { %2982 = shalt.err (!%p2979_p13)
}
  0x4a   : > { %s2983_s27 = scalar_lea.vmem %s3424_s4, 1024  ;;  %p2991_p7 = scmp.lt.s32.totalorder %s3424_s4, %s3424_s4 }
  0x4b   : > { %p2984_p0 = scmp.ne.s32.totalorder %s3424_s4, %s2983_s27  ;;  %p2992_p9 = scmp.lt.s32.totalorder %s2983_s27, %s2983_s27 }
  0x4d   : > { %p2986_p2 = pnand %p2984_p0, %p3436_p8  ;;  %p2993_p4 = por %p2992_p9, %p2991_p7 }
  0x4f   : > { %p2987_p5 = pneg %p2986_p2 }
  0x51   : > { %p2994_p10 = pnand %p2993_p4, %p2987_p5 }
  0x53   : > { %2997 = shalt.err (!%p2994_p10)
}
  0x54   : > { %s3257_s14 = smov 64   ;;  %s3258_s11 = smov 4  }
  0x55   : > { %2727 = dma.hbm_to_vmem [thread:$0]  (!%p3420_p6), %s4011_s17, 1024, %s3424_s4, [#allocation9], %s3257_s14, %s3257_s14, %s3258_s11  }
  0x56   : > { %s4012_s9 = sld [smem:[#allocation30_spill]] }
  0x5c   : > { %s2998_s0 = scalar_lea.hbm %s4012_s9, 1024 }
  0x5d   : > { %p2999_p11 = scmp.ne.s32.totalorder %s4012_s9, %s2998_s0  ;;  %p3005_p0 = scmp.lt.u32.totalorder %s2998_s0, %s4012_s9 }
  0x5f   : > { %p3001_p12 = pnand %p2999_p11, %p3436_p8 }
  0x61   : > { %p3002_p13 = pneg %p3001_p12 }
  0x63   : > { %p3007_p2 = pnand %p3005_p0, %p3002_p13 }
  0x65   : > { %3010 = shalt.err (!%p3007_p2)
}
  0x66   : > { %s3011_s12 = scalar_lea.vmem %s597_s5, 1024  ;;  %p3019_p4 = scmp.lt.s32.totalorder %s597_s5, %s597_s5 }
  0x67   : > { %p3012_p5 = scmp.ne.s32.totalorder %s597_s5, %s3011_s12  ;;  %p3020_p10 = scmp.lt.s32.totalorder %s3011_s12, %s3011_s12 }
  0x69   : > { %p3014_p7 = pnand %p3012_p5, %p3436_p8  ;;  %p3021_p1 = por %p3020_p10, %p3019_p4 }
  0x6b   : > { %p3015_p9 = pneg %p3014_p7 }
  0x6d   : > { %p3022_p3 = pnand %p3021_p1, %p3015_p9 }
  0x6f   : > { %3025 = shalt.err (!%p3022_p3)
}
  0x70   : > { %2733 = dma.hbm_to_vmem [thread:$0]  (!%p3420_p6), %s4012_s9, 1024, %s597_s5, [#allocation12], %s3257_s14, %s3257_s14, %s3258_s11  }
  0x71   : > { %s3259_s16 = smov [#allocation7]   ;;  %s3260_s20 = smov [#allocation10]  }
  0x72   : > { %s548_s24 = sshll.u32 %s3259_s16, 4  ;;  %s580_s0 = sshll.u32 %s3260_s20, 4  ;;  %s549_s24 = int_to_ptr.vmem [resolvable:$true] %s548_s24  ;;  %s581_s0 = int_to_ptr.vmem [resolvable:$true] %s580_s0 }
  0x73   : > { %s4013_s27 = sld [smem:[#allocation26_spill]] }
  0x79   : > { %s3026_s12 = scalar_lea.hbm %s4013_s27, 1024 }
  0x7a   : > { %p3027_p1 = scmp.ne.s32.totalorder %s4013_s27, %s3026_s12  ;;  %p3033_p12 = scmp.lt.u32.totalorder %s3026_s12, %s4013_s27 }
  0x7c   : > { %p3029_p3 = pnand %p3027_p1, %p3436_p8 }
  0x7e   : > { %p3030_p11 = pneg %p3029_p3 }
  0x80   : > { %p3035_p13 = pnand %p3033_p12, %p3030_p11 }
  0x82   : > { %3038 = shalt.err (!%p3035_p13)
}
  0x83   : > { %s3039_s5 = scalar_lea.vmem %s549_s24, 1024  ;;  %p3047_p7 = scmp.lt.s32.totalorder %s549_s24, %s549_s24 }
  0x84   : > { %p3040_p0 = scmp.ne.s32.totalorder %s549_s24, %s3039_s5  ;;  %p3048_p9 = scmp.lt.s32.totalorder %s3039_s5, %s3039_s5 }
  0x86   : > { %p3042_p2 = pnand %p3040_p0, %p3436_p8  ;;  %p3049_p4 = por %p3048_p9, %p3047_p7 }
  0x88   : > { %p3043_p5 = pneg %p3042_p2 }
  0x8a   : > { %p3050_p10 = pnand %p3049_p4, %p3043_p5 }
  0x8c   : > { %3053 = shalt.err (!%p3050_p10)
}
  0x8d   : > { %2724 = dma.hbm_to_vmem [thread:$0]  (!%p3420_p6), %s4013_s27, 1024, %s549_s24, [#allocation6], %s3257_s14, %s3257_s14, %s3258_s11  }
  0x8e   : > { %s4014_s7 = sld [smem:[#allocation29_spill]] }
  0x94   : > { %s3054_s16 = scalar_lea.hbm %s4014_s7, 1024 }
  0x95   : > { %p3055_p1 = scmp.ne.s32.totalorder %s4014_s7, %s3054_s16  ;;  %p3061_p12 = scmp.lt.u32.totalorder %s3054_s16, %s4014_s7 }
  0x97   : > { %p3057_p3 = pnand %p3055_p1, %p3436_p8 }
  0x99   : > { %p3058_p11 = pneg %p3057_p3 }
  0x9b   : > { %p3063_p13 = pnand %p3061_p12, %p3058_p11 }
  0x9d   : > { %3066 = shalt.err (!%p3063_p13)
}
  0x9e   : > { %s3067_s4 = scalar_lea.vmem %s581_s0, 1024  ;;  %p3075_p7 = scmp.lt.s32.totalorder %s581_s0, %s581_s0 }
  0x9f   : > { %p3068_p0 = scmp.ne.s32.totalorder %s581_s0, %s3067_s4  ;;  %p3076_p9 = scmp.lt.s32.totalorder %s3067_s4, %s3067_s4 }
  0xa1   : > { %p3070_p2 = pnand %p3068_p0, %p3436_p8  ;;  %p3077_p4 = por %p3076_p9, %p3075_p7 }
  0xa3   : > { %p3071_p5 = pneg %p3070_p2 }
  0xa5   : > { %p3078_p10 = pnand %p3077_p4, %p3071_p5 }
  0xa7   : > { %3081 = shalt.err (!%p3078_p10)
}
  0xa8   : > { %2730 = dma.hbm_to_vmem [thread:$0]  (!%p3420_p6), %s4014_s7, 1024, %s581_s0, [#allocation9], %s3257_s14, %s3257_s14, %s3258_s11  }
  0xa9   : > { %s3261_s17 = smov [#allocation13]   ;;  %s3262_s23 = smov [#allocation14]  }
  0xaa   : > { %s618_s1 = sshll.u32 %s3261_s17, 4  ;;  %s634_s22 = sshll.u32 %s3262_s23, 4  ;;  %s619_s1 = int_to_ptr.vmem [resolvable:$true] %s618_s1  ;;  %s635_s22 = int_to_ptr.vmem [resolvable:$true] %s634_s22 }
  0xab   : > { %s3082_s30 = scalar_lea.hbm %s3969_s13, 2048 }
  0xac   : > { %p3083_p1 = scmp.ne.s32.totalorder %s3969_s13, %s3082_s30  ;;  %p3089_p12 = scmp.lt.u32.totalorder %s3082_s30, %s3969_s13 }
  0xae   : > { %p3085_p3 = pnand %p3083_p1, %p3436_p8 }
  0xb0   : > { %p3086_p11 = pneg %p3085_p3 }
  0xb2   : > { %p3091_p13 = pnand %p3089_p12, %p3086_p11 }
  0xb4   : > { %3094 = shalt.err (!%p3091_p13)
}
  0xb5   : > { %s3095_s0 = scalar_lea.vmem %s619_s1, 2048  ;;  %p3103_p7 = scmp.lt.s32.totalorder %s619_s1, %s619_s1 }
  0xb6   : > { %p3096_p0 = scmp.ne.s32.totalorder %s619_s1, %s3095_s0  ;;  %p3104_p9 = scmp.lt.s32.totalorder %s3095_s0, %s3095_s0 }
  0xb8   : > { %p3098_p2 = pnand %p3096_p0, %p3436_p8  ;;  %p3105_p4 = por %p3104_p9, %p3103_p7 }
  0xba   : > { %p3099_p5 = pneg %p3098_p2 }
  0xbc   : > { %p3106_p10 = pnand %p3105_p4, %p3099_p5 }
  0xbe   : > { %3109 = shalt.err (!%p3106_p10)
}
  0xbf   : > { %s4015_s5 = smov 8   ;;  %s4016_s17 = smov 128  }
  0xc0   : > { %2736 = dma.hbm_to_vmem [thread:$0]  (!%p3420_p6), %s3969_s13, 2048, %s619_s1, [#allocation12], %s4016_s17, %s4016_s17, %s4015_s5  }
  0xc1   : > { %s3110_s21 = scalar_lea.hbm %s3971_s15, 2048 }
  0xc2   : > { %p3111_p1 = scmp.ne.s32.totalorder %s3971_s15, %s3110_s21  ;;  %p3117_p12 = scmp.lt.u32.totalorder %s3110_s21, %s3971_s15 }
  0xc4   : > { %p3113_p3 = pnand %p3111_p1, %p3436_p8 }
  0xc6   : > { %p3114_p11 = pneg %p3113_p3 }
  0xc8   : > { %p3119_p13 = pnand %p3117_p12, %p3114_p11 }
  0xca   : > { %3122 = shalt.err (!%p3119_p13)
}
  0xcb   : > { %s3123_s23 = scalar_lea.vmem %s635_s22, 2048  ;;  %p3131_p7 = scmp.lt.s32.totalorder %s635_s22, %s635_s22 }
  0xcc   : > { %p3124_p0 = scmp.ne.s32.totalorder %s635_s22, %s3123_s23  ;;  %p3132_p9 = scmp.lt.s32.totalorder %s3123_s23, %s3123_s23 }
  0xce   : > { %p3126_p2 = pnand %p3124_p0, %p3436_p8  ;;  %p3133_p4 = por %p3132_p9, %p3131_p7 }
  0xd0   : > { %p3127_p5 = pneg %p3126_p2 }
  0xd2   : > { %p3134_p10 = pnand %p3133_p4, %p3127_p5 }
  0xd4   : > { %3137 = shalt.err (!%p3134_p10)
}
  0xd5   : > { %2739 = dma.hbm_to_vmem [thread:$0]  (!%p3420_p6), %s3971_s15, 2048, %s635_s22, [#allocation15], %s3257_s14, %s3257_s14, %s3258_s11  }
  0xd6   : > { %s2372_s18 = sadd.s32 4294967294, %s3250_s19   ;;  %s3594_s29 = sadd.s32 1, %s3250_s19  }
  0xd7   : > { %s48_s20 = sadd.s32 1, %s3246_s26  ;;  %s45_s30 = ssub.s32 %s3250_s19, %s3594_s29 }
  0xd8   : > { %p55_p8 = scmp.ne.s32.totalorder %s3246_s26, %s3242_s25  ;;  %p46_p1 = scmp.eq.s32.totalorder %s45_s30, 0 }
  0xd9   : > { %p56_p3 = scmp.eq.s32.totalorder %s3250_s19, 0  ;;  %p61_p11 = scmp.ne.s32.totalorder %s3242_s25, %s3238_s2 }
  0xda   : > { %p510_p12 = scmp.eq.s32.totalorder %s3404_s3, 1  ;;  %p4017_p0 = scmp.eq.s32.totalorder %s3404_s3, 0 }
  0xdb   : > { %s3606_s21 = scalar_select %p46_p1, %s3246_s26, %s48_s20  }
  0xdc   : > { %p57_p13 = por %p56_p3, %p55_p8  ;;  %p3610_p2 = por %p4017_p0, %p61_p11 }
  0xdd   : > { %p3614_p6 = por %p510_p12, %p55_p8  ;;  %p516_p5 = scmp.eq.s32.totalorder %s2372_s18, 1 }
  0xde   : > { %p2755_p7 = scmp.lt.s32.totalorder %s3250_s19, 2  ;;  %s663_s11 = sand.u32 1, %s3246_s26  }
  0xdf   : > { %s4019_s14 = scalar_select %p3614_p6, 1, 0 }
  0xe0   : > { %p3620_p9 = por %p516_p5, %p61_p11  ;;  %s2382_s4 = sshll.u32 %s663_s11, 4 }
  0xe1   : > { %s2482_s24 = sshll.u32 %s3250_s19, 8  ;;  %s4021_s1 = sld [smem:[#allocation23_spill]] }
  0xe2   : > { %s4020_s22 = scalar_select %p3620_p9, 1, 0 }
  0xe3   : > { %s667_s20 = scalar_lea.vmem [#allocation2], %s2382_s4  ;;  %p3630_p4 = pnand %p2755_p7, %p57_p13 }
  0xe4   : > { %s674_s30 = sshll.u32 %s667_s20, 4  ;;  %s3636_s7 = scalar_lea.sflag [#allocation3], %s663_s11  ;;  %s3634_s30 = int_to_ptr.vmem [resolvable:$true] %s674_s30 }
  0xe5   : > { %p3140_p8 = pneg %p3630_p4 }
  0xe7   : > { %s3628_s16 = scalar_lea.hbm %s4021_s1, %s2482_s24  ;;  %s3143_s0 = scalar_lea.hbm %s4021_s1, 512 }
  0xe8   : > { %s3138_s9 = scalar_lea.hbm %s3628_s16, 256  ;;  %p3144_p11 = scmp.lt.u32.totalorder %s3628_s16, %s4021_s1 }
  0xe9   : > { %p3139_p10 = scmp.ne.s32.totalorder %s3628_s16, %s3138_s9  ;;  %p3145_p12 = scmp.lt.u32.totalorder %s3143_s0, %s3138_s9 }
  0xea   : > { %p3147_p0 = scmp.lt.u32.totalorder %s3138_s9, %s3628_s16 }
  0xeb   : > { %p3141_p1 = pnand %p3140_p8, %p3139_p10  ;;  %p3146_p13 = por %p3145_p12, %p3144_p11 }
  0xed   : > { %p3142_p3 = pneg %p3141_p1  ;;  %p3148_p5 = por %p3147_p0, %p3146_p13 }
  0xef   : > { %p3149_p7 = pnand %p3148_p5, %p3142_p3 }
  0xf1   : > { %3152 = shalt.err (!%p3149_p7)
}
  0xf2   : > { %s3153_s11 = scalar_lea.vmem %s3634_s30, 256  ;;  %s3263_s4 = smov [#allocation2]  }
  0xf3   : > { %p3154_p10 = scmp.ne.s32.totalorder %s3634_s30, %s3153_s11  ;;  %s3158_s24 = sshll.u32 %s3263_s4, 4  ;;  %s3159_s24 = int_to_ptr.vmem [resolvable:$false] %s3158_s24 }
  0xf4   : > { %s3160_s23 = scalar_lea.vmem %s3159_s24, 512  ;;  %p3161_p6 = scmp.lt.s32.totalorder %s3634_s30, %s3159_s24 }
  0xf5   : > { %p3156_p1 = pnand %p3154_p10, %p3140_p8  ;;  %p3162_p11 = scmp.lt.s32.totalorder %s3160_s23, %s3153_s11 }
  0xf7   : > { %p3157_p9 = pneg %p3156_p1  ;;  %p3163_p12 = por %p3162_p11, %p3161_p6 }
  0xf9   : > { %p3164_p13 = pnand %p3163_p12, %p3157_p9 }
  0xfb   : > { %3167 = shalt.err (!%p3164_p13)
}
  0xfc   : > { %2743 = dma.hbm_to_vmem [thread:$0]  (!%p3630_p4), %s3628_s16, 256, %s3634_s30, %s3636_s7, %s4016_s17, %s4016_s17, %s4015_s5  }
  0xfd   : > { %p4023_p8 = scmp.ne.s32.totalorder %s4007_s28, 0 }
  0xfe   : > { %s3670_s9 = sand.u32 (!%p4023_p8), 1, %s3242_s25  }
  0xff   : > { %692 = sbr.rel (%p4023_p8) target bundleno = 4338 (0x10f2), region = 104  ;;  %s2386_s0 = sshll.u32 (!%p4023_p8), %s3670_s9, 4 }
 0x100   : > { %s695_s20 = scalar_lea.sflag (!%p4023_p8), [#allocation3], %s3670_s9  ;;  %s3676_s18 = scalar_lea.vmem (!%p4023_p8), [#allocation2], %s2386_s0 }
 0x106   : > { %3213 = dma.done.wait (%p3610_p2), %s695_s20, 256  }
 0x107   : > { %3215 = vsyncadd (%p3610_p2), %s695_s20, 4294967040  ;;  %p4024_p6 = scmp.eq.s32.totalorder %s3404_s3, 0 }
 0x109   : > { %3217 = dma.done.wait (%p4024_p6), [#allocation6], 1280   ;;  %p4025_p9 = pmov %p4024_p6 }
 0x10a   : > { %p4026_p4 = pmov %p4024_p6 }
 0x10b   : > { %3219 = vsyncadd (%p4025_p9), [#allocation6], 4294966016 }
 0x10c   : > { %3221 = dma.done.wait (%p4026_p4), [#allocation9], 2048   ;;  %p4027_p3 = pmov %p4026_p4 }
 0x10e   : > { %3223 = vsyncadd (%p4027_p3), [#allocation9], 4294965248  ;;  %p4028_p0 = pmov %p4027_p3 }
 0x110   : > { %3225 = dma.done.wait (%p4028_p0), [#allocation12], 3072   ;;  %p4029_p5 = pmov %p4028_p0 }
 0x111   : > { %p4030_p2 = pmov %p4028_p0 }
 0x112   : > { %3227 = vsyncadd (%p4029_p5), [#allocation12], 4294964224 }
 0x113   : > { %3229 = dma.done.wait (%p4030_p2), [#allocation15], 2048   ;;  %p4031_p7 = pmov %p4028_p0 }
 0x114   : > { %v3264_v0 = vmov 0.0   ;;  %vm3265_vm0 = vmmov 0   ;;  %v2830_v1 = vld [vmem:[#allocation8] sm:$0xff]   ;;  %v2831_v2 = vld [vmem:[#allocation8 + $0x8] sm:$0xff]   ;;  %v2833_v5 = vld [vmem:[#allocation8 + $0x10] sm:$0xff]   ;;  %s4032_s12 = sld [smem:[#allocation27_spill]] }
 0x115   : > { %3231 = vsyncadd (%p4031_p7), [#allocation15], 4294965248  ;;  %2578 = vmatprep.subr.bf16.mxu1 %v3264_v0  ;;  %2558 = vmatprep.subr.bf16.mxu0 %v3264_v0  ;;  %v2832_v3 = vld [vmem:[#allocation7] sm:$0xff]   ;;  %v2834_v4 = vld [vmem:[#allocation7 + $0x8] sm:$0xff]   ;;  %vm1145_vm1 = vcmask 261120   ;;  %p788_p10 = scmp.lt.s32.totalorder %s3404_s3, 1 }
 0x116   : > { %2594 = vmatprep.mubr.msk.bf16.mxu1 %vm3265_vm0, %v3264_v0  ;;  %2574 = vmatprep.mubr.msk.bf16.mxu0 %vm3265_vm0, %v3264_v0  ;;  %v2836_v6 = vld [vmem:[#allocation7 + $0x10] sm:$0xff]   ;;  %v2835_v7 = vld [vmem:[#allocation8 + $0x18] sm:$0xff]   ;;  %v2837_v9 = vld [vmem:[#allocation8 + $0x20] sm:$0xff]   ;;  %s4033_s4 = sld [smem:[#allocation25_spill]]  ;;  %vm1197_vm2 = vcmask 130048   ;;  %s3266_s23 = smov 96  }
 0x117   : > { %2579 = vmatpush3.bf16.msra.mxu1 %v2830_v1  ;;  %2559 = vmatpush3.bf16.msra.mxu0 %v2832_v3  ;;  %v2838_v8 = vld [vmem:[#allocation7 + $0x18] sm:$0xff]   ;;  %v2839_v10 = vld [vmem:[#allocation8 + $0x28] sm:$0xff]   ;;  %v2840_v11 = vld [vmem:[#allocation7 + $0x20] sm:$0xff]   ;;  %s789_s16 = scalar_select %p788_p10, %s3404_s3, 1  ;;  %vm1669_vm3 = vcmask 523264   ;;  %vm1672_vm4 = vcmask 785408  }
 0x118   : > { %2580 = vmatprep.subr.bf16.mxu1 %v3264_v0  ;;  %2560 = vmatprep.subr.bf16.mxu0 %v3264_v0  ;;  %v2842_v12 = vld [vmem:[#allocation7 + $0x28] sm:$0xff]   ;;  %v2841_v13 = vld [vmem:[#allocation8 + $0x30] sm:$0xff]   ;;  %v2843_v15 = vld [vmem:[#allocation8 + $0x38] sm:$0xff]   ;;  %s3267_s7 = smov 64   ;;  %s3268_s28 = smov 32  }
 0x119   : > { %v2844_v14 = vld [vmem:[#allocation7 + $0x30] sm:$0xff]   ;;  %v3719_v17 = vld [vmem:[%s3676_s18 + $0x8] sm:$0xff]  ;;  %v2846_v37 = vld [vmem:[#allocation10] sm:$0xff]   ;;  %s4034_s30 = sld [smem:[#allocation31_spill]]  ;;  %s4037_s5 = sld [smem:[#allocation34_spill]] }
 0x11a   : > { %v3716_v16 = vld [vmem:[%s3676_s18] sm:$0xff]  ;;  %v2845_v18 = vld [vmem:[#allocation7 + $0x38] sm:$0xff]   ;;  %v2847_v38 = vld [vmem:[#allocation10 + $0x8] sm:$0xff]   ;;  %s4036_s18 = sld [smem:[#allocation33_spill]]  ;;  %s2210_s17 = scalar_lea.sflag [#allocation4], %s3670_s9 }
 0x11b   : > { %2581 = vmatpush3.bf16.msra.mxu1 %v2831_v2  ;;  %2561 = vmatpush3.bf16.msra.mxu0 %v2834_v4  ;;  %v805_v19 = vpack.c.bf16 %v3719_v17, %v3716_v16  ;;  %v2405_v20 = vld [vmem:[%s3962_s6] ss:$0 sm:$0xff]  ;;  %v2849_v40 = vld [vmem:[#allocation10 + $0x18] sm:$0xff]   ;;  %v2850_v41 = vld [vmem:[#allocation10 + $0x20] sm:$0xff]   ;;  %p4041_p11 = scmp.ne.s32.totalorder %s4019_s14, 0 }
 0x11c   : > { %2582 = vmatprep.subr.bf16.mxu1 %v3264_v0  ;;  %2562 = vmatprep.subr.bf16.mxu0 %v3264_v0  ;;  %v2396_v22 = vld [vmem:[%s4032_s12] ss:$0 sm:$0xff]  ;;  %v2851_v42 = vld [vmem:[#allocation10 + $0x28] sm:$0xff]   ;;  %v2853_v44 = vld [vmem:[#allocation10 + $0x38] sm:$0xff]   ;;  %s790_s24 = scalar_lea.vmem %s4033_s4, %s789_s16  ;;  %s4038_s16 = sld [smem:[#allocation35_spill]] }
 0x11d   : > { %v2848_v39 = vld [vmem:[#allocation10 + $0x10] sm:$0xff]   ;;  %v795_v47 = vld [vmem:[#allocation5 + $0x8] sm:$0xff]  ;;  %s4039_s4 = sld [smem:[#allocation36_spill]] }
 0x11e   : > { %v2852_v43 = vld [vmem:[#allocation10 + $0x30] sm:$0xff]  }
 0x11f   : > { %2583 = vmatpush3.bf16.msra.mxu1 %v2833_v5  ;;  %2563 = vmatpush3.bf16.msra.mxu0 %v2836_v6  ;;  %v794_v45 = vld [vmem:[#allocation5] sm:$0xff] }
 0x120   : > { %2584 = vmatprep.subr.bf16.mxu1 %v3264_v0  ;;  %2564 = vmatprep.subr.bf16.mxu0 %v3264_v0  ;;  %v2395_v46 = vld [vmem:[%s790_s24] ss:$0 sm:$0xff]  ;;  %s4035_s24 = sld [smem:[#allocation32_spill]] }
 0x121   : > { %v3764_v48 = vadd.f32 %v2395_v46, %v794_v45  ;;  %v3766_v52 = vadd.f32 %v2395_v46, %v795_v47 }
 0x123   : > { %2585 = vmatpush3.bf16.msra.mxu1 %v2835_v7  ;;  %2565 = vmatpush3.bf16.msra.mxu0 %v2838_v8 }
 0x124   : > { %2586 = vmatprep.subr.bf16.mxu1 %v3264_v0  ;;  %2566 = vmatprep.subr.bf16.mxu0 %v3264_v0 }
 0x127   : > { %2587 = vmatpush3.bf16.msra.mxu1 %v2837_v9  ;;  %2567 = vmatpush3.bf16.msra.mxu0 %v2840_v11 }
 0x128   : > { %2588 = vmatprep.subr.bf16.mxu1 %v3264_v0  ;;  %2568 = vmatprep.subr.bf16.mxu0 %v3264_v0 }
 0x12b   : > { %2589 = vmatpush3.bf16.msra.mxu1 %v2839_v10  ;;  %2569 = vmatpush3.bf16.msra.mxu0 %v2842_v12  ;;  %v2414_v10 = vld [vmem:[%s3964_s8] ss:$0 sm:$0xff] }
 0x12c   : > { %2590 = vmatprep.subr.bf16.mxu1 %v3264_v0  ;;  %2570 = vmatprep.subr.bf16.mxu0 %v3264_v0 }
 0x12f   : > { %2591 = vmatpush3.bf16.msra.mxu1 %v2841_v13  ;;  %2571 = vmatpush3.bf16.msra.mxu0 %v2844_v14 }
 0x130   : > { %2592 = vmatprep.subr.bf16.mxu1 %v3264_v0  ;;  %2572 = vmatprep.subr.bf16.mxu0 %v3264_v0 }
 0x133   : > { %2593 = vmatpush3.bf16.msra.mxu1 %v2843_v15  ;;  %2573 = vmatpush3.bf16.msra.mxu0 %v2845_v18 }
 0x134   : > { %2618 = vmatprep.subr.bf16.mxu1 %v3264_v0  ;;  %2598 = vmatprep.subr.bf16.mxu0 %v3264_v0 }
 0x136   : > { %2595 = vmatmul.mubr.bf16.vlgmr.msra.gmra.mrb[0].mxu1 %v805_v19  ;;  %2575 = vmatmul.mubr.bf16.vlgmr.msra.gmra.mrb[0].mxu0 %v805_v19 }
 0x137   : > { %2620 = vmatprep.mubr.msk.bf16.mxu1 %vm3265_vm0, %v3264_v0  ;;  %2614 = vmatprep.mubr.msk.bf16.mxu0 %vm3265_vm0, %v3264_v0 }
 0x138   : > { %2599 = vmatpush3.bf16.msra.mxu0 %v2846_v37 }
 0x139   : > { %2600 = vmatprep.subr.bf16.mxu0 %v3264_v0 }
 0x13c   : > { %2601 = vmatpush3.bf16.msra.mxu0 %v2847_v38 }
 0x13d   : > { %2602 = vmatprep.subr.bf16.mxu0 %v3264_v0 }
 0x140   : > { %2603 = vmatpush3.bf16.msra.mxu0 %v2848_v39 }
 0x141   : > { %2604 = vmatprep.subr.bf16.mxu0 %v3264_v0 }
 0x144   : > { %2605 = vmatpush3.bf16.msra.mxu0 %v2849_v40 }
 0x145   : > { %2606 = vmatprep.subr.bf16.mxu0 %v3264_v0 }
 0x148   : > { %2607 = vmatpush3.bf16.msra.mxu0 %v2850_v41 }
 0x149   : > { %2608 = vmatprep.subr.bf16.mxu0 %v3264_v0 }
 0x14c   : > { %2609 = vmatpush3.bf16.msra.mxu0 %v2851_v42 }
 0x14d   : > { %2610 = vmatprep.subr.bf16.mxu0 %v3264_v0 }
 0x150   : > { %2611 = vmatpush3.bf16.msra.mxu0 %v2852_v43 }
 0x151   : > { %2612 = vmatprep.subr.bf16.mxu0 %v3264_v0 }
 0x154   : > { %2613 = vmatpush3.bf16.msra.mxu0 %v2853_v44 }
 0x155   : > { %2666 = vmatprep.subr.bf16.mxu0 %v3264_v0 }
 0x157   : > { %2615 = vmatmul.mubr.bf16.vlgmr.msra.gmra.mrb[4].mxu0 %v805_v19 }
 0x158   : > { %2682 = vmatprep.mubr.msk.bf16.mxu0 %vm3265_vm0, %v3264_v0 }
 0x209   : > { %v1023_v21 = vpop.f32.mrb[0].mxu1  ;;  %v911_v25 = vpop.f32.mrb[0].mxu0 }
 0x20a   : > { %v2596_v23 = vpop.f32.mrb[1].mxu1  ;;  %v1024_v26 = vadd.f32 %v2405_v20, %v1023_v21  ;;  %v912_v29 = vadd.f32 %v2396_v22, %v911_v25  ;;  %v2576_v30 = vpop.f32.mrb[1].mxu0 }
 0x20b   : > { %v1026_v24 = vpop.f32.mrb[2].mxu1  ;;  %v914_v31 = vpop.f32.mrb[2].mxu0 }
 0x20c   : > { %v1027_v27 = vadd.f32 %v2405_v20, %v1026_v24  ;;  %v2597_v28 = vpop.f32.mrb[3].mxu1  ;;  %v915_v33 = vadd.f32 %v2396_v22, %v914_v31  ;;  %v2577_v34 = vpop.f32.mrb[3].mxu0 }
 0x20e   : > { %v3738_v32 = vpack.c.bf16 %v1027_v27, %v1024_v26  ;;  %v3740_v35 = vpack.c.bf16 %v915_v33, %v912_v29 }
 0x210   : > { %v1150_v36 = vsel %vm1145_vm1, %v3738_v32, 0 }
 0x211   : > { %2619 = vmatpush3.bf16.xpose.msra.mxu1 %v1150_v36 }
 0x212   : > { %2624 = vmatprep.subr.bf16.mxu1 %v3264_v0 }
 0x218   : > { %2621 = vmatmul.mubr.msk.bf16.vlgmr.msra.gmra.mrb[4].mxu1 %vm1145_vm1, %v3740_v35 }
 0x219   : > { %2626 = vmatprep.mubr.msk.bf16.mxu1 %vm3265_vm0, %v3264_v0 }
 0x22a   : > { %v1135_v7 = vpop.f32.mrb[4].mxu0 }
 0x22b   : > { %v2616_v8 = vpop.f32.mrb[5].mxu0  ;;  %v1136_v12 = vadd.f32 %v2414_v10, %v1135_v7 }
 0x22c   : > { %v1138_v9 = vpop.f32.mrb[6].mxu0 }
 0x22d   : > { %v2617_v11 = vpop.f32.mrb[7].mxu0  ;;  %v1139_v13 = vadd.f32 %v2414_v10, %v1138_v9 }
 0x22f   : > { %v3781_v14 = vpack.c.bf16 %v1139_v13, %v1136_v12 }
 0x231   : > { %2625 = vmatpush3.bf16.msra.mxu1 %v3781_v14 }
 0x232   : > { %2630 = vmatprep.subr.bf16.mxu1 %v3264_v0 }
 0x2eb   : > { %v1186_v49 = vpop.f32.mrb[4].mxu1 }
 0x2ec   : > { %v1193_v50 = vmul.f32 0.17677669, %v1186_v49  ;;  %v2622_v51 = vpop.f32.mrb[5].mxu1 }
 0x2ed   : > { %v1189_v53 = vpop.f32.mrb[6].mxu1 }
 0x2ee   : > { %v1194_v54 = vmul.f32 0.17677669, %v1189_v53  ;;  %v2623_v55 = vpop.f32.mrb[7].mxu1  ;;  %v1195_v56 = vadd.f32 %v1193_v50, %v3764_v48 }
 0x2f0   : > { %v1198_v57 = vsel %vm1197_vm2, %v1195_v56, -inf  ;;  %v1196_v58 = vadd.f32 %v1194_v54, %v3766_v52 }
 0x2f1   : > { %1199 = vmax.xlane.f32.xlu0 %v1198_v57 }
 0x2f2   : > { %v1201_v59 = vsel %vm1197_vm2, %v1196_v58, -inf }
 0x2f5   : > { %1202 = vmax.xlane.f32.xlu0 %v1201_v59 }
 0x30b   : > { %1269 = vrot.lane.b32.xlu0 %v3738_v32, %s3266_s23 }
 0x37e   : > { %v1200_v60 = vpop.xlane.xlu0 %1199 }
 0x37f   : > { %v1204_v61 = vsub.f32 %v1195_v56, %v1200_v60 }
 0x381   : > { %v1206_v62 = vmul.f32 1.442695, %v1204_v61 }
 0x382   : > { %v1203_v63 = vpop.xlane.xlu0 %1202 }
 0x383   : > { %2902 = vpow2.f32 %v1206_v62  ;;  %v1205_v1 = vsub.f32 %v1196_v58, %v1203_v63 }
 0x385   : > { %v1208_v2 = vmul.f32 1.442695, %v1205_v1 }
 0x386   : > { %v1270_v23 = vpop.permute.xlu0 %1269 }
 0x387   : > { %2904 = vpow2.f32 %v1208_v2  ;;  %v1275_v25 = vsel %vm1145_vm1, %v1270_v23, 0 }
 0x38d   : > { %v2903_v3 = vpop.eup %2902 }
 0x38e   : > { %v1210_v4 = vsel %vm1197_vm2, %v2903_v3, 0.0 }
 0x38f   : > { %1211 = vadd.xlane.f32.xlu1 %v1210_v4 }
 0x391   : > { %v2905_v5 = vpop.eup %2904 }
 0x392   : > { %v1213_v6 = vsel %vm1197_vm2, %v2905_v5, 0.0 }
 0x393   : > { %1214 = vadd.xlane.f32.xlu1 %v1213_v6 }
 0x3a4   : > { %1266 = vrot.lane.b32.xlu1 %v3740_v35, %s3266_s23 }
 0x41c   : > { %v1212_v15 = vpop.xlane.xlu1 %1211 }
 0x41d   : > { %2906 = vrcp.f32 %v1212_v15 }
 0x420   : > { %v1215_v18 = vpop.xlane.xlu1 %1214 }
 0x421   : > { %2908 = vrcp.f32 %v1215_v18 }
 0x424   : > { %v1267_v26 = vpop.permute.xlu1 %1266 }
 0x427   : > { %v2907_v19 = vpop.eup %2906 }
 0x428   : > { %v1218_v21 = vmul.f32 %v2907_v19, %v2903_v3 }
 0x42b   : > { %v2909_v20 = vpop.eup %2908 }
 0x42c   : > { %v1219_v22 = vmul.f32 %v2909_v20, %v2905_v5 }
 0x42e   : > { %v1220_v24 = vpack.c.bf16 %v1219_v22, %v1218_v21 }
 0x430   : > { %2627 = vmatmul.mubr.msk.bf16.vlgmr.msra.gmra.mrb[8].mxu1 %vm1197_vm2, %v1220_v24 }
 0x431   : > { %2631 = vmatpush3.bf16.xpose.msra.mxu1 %v1275_v25  ;;  %2632 = vmatprep.mubr.msk.bf16.mxu1 %vm3265_vm0, %v3264_v0 }
 0x432   : > { %2636 = vmatprep.subr.bf16.mxu1 %v3264_v0 }
 0x438   : > { %2633 = vmatmul.mubr.msk.bf16.vlgmr.msra.gmra.mrb[12].mxu1 %vm1145_vm1, %v1267_v26 }
 0x439   : > { %2638 = vmatprep.mubr.msk.bf16.mxu1 %vm3265_vm0, %v3264_v0 }
 0x503   : > { %v3793_v27 = vpop.f32.mrb[8].mxu1 }
 0x504   : > { %v2628_v28 = vpop.f32.mrb[9].mxu1 }
 0x505   : > { %v3795_v29 = vpop.f32.mrb[10].mxu1 }
 0x506   : > { %v2629_v30 = vpop.f32.mrb[11].mxu1 }
 0x50b   : > { %v1311_v31 = vpop.f32.mrb[12].mxu1 }
 0x50c   : > { %v1318_v33 = vmul.f32 0.17677669, %v1311_v31  ;;  %v2634_v34 = vpop.f32.mrb[13].mxu1 }
 0x50d   : > { %v1314_v36 = vpop.f32.mrb[14].mxu1 }
 0x50e   : > { %v1319_v37 = vmul.f32 0.17677669, %v1314_v36  ;;  %v2635_v38 = vpop.f32.mrb[15].mxu1  ;;  %v1320_v39 = vadd.f32 %v1318_v33, %v3764_v48 }
 0x510   : > { %v1322_v40 = vsel %vm1197_vm2, %v1320_v39, -inf  ;;  %v1321_v41 = vadd.f32 %v1319_v37, %v3766_v52 }
 0x511   : > { %1323 = vmax.xlane.f32.xlu1 %v1322_v40 }
 0x512   : > { %v1325_v42 = vsel %vm1197_vm2, %v1321_v41, -inf }
 0x513   : > { %1326 = vmax.xlane.f32.xlu0 %v1325_v42 }
 0x59e   : > { %v1324_v43 = vpop.xlane.xlu1 %1323 }
 0x59f   : > { %v1328_v44 = vsub.f32 %v1320_v39, %v1324_v43 }
 0x5a0   : > { %v1327_v45 = vpop.xlane.xlu0 %1326 }
 0x5a1   : > { %v1330_v46 = vmul.f32 1.442695, %v1328_v44  ;;  %v1329_v47 = vsub.f32 %v1321_v41, %v1327_v45 }
 0x5a3   : > { %2910 = vpow2.f32 %v1330_v46  ;;  %v1332_v49 = vmul.f32 1.442695, %v1329_v47 }
 0x5a5   : > { %2912 = vpow2.f32 %v1332_v49 }
 0x5ad   : > { %v2911_v50 = vpop.eup %2910 }
 0x5ae   : > { %v1334_v51 = vsel %vm1197_vm2, %v2911_v50, 0.0 }
 0x5af   : > { %v2913_v53 = vpop.eup %2912  ;;  %1335 = vadd.xlane.f32.xlu0 %v1334_v51 }
 0x5b0   : > { %v1337_v54 = vsel %vm1197_vm2, %v2913_v53, 0.0 }
 0x5b1   : > { %1338 = vadd.xlane.f32.xlu1 %v1337_v54 }
 0x5c2   : > { %1395 = vrot.lane.b32.xlu1 %v3738_v32, %s3267_s7 }
 0x5c5   : > { %1346 = vrot.lane.b32.xlu0 %v3781_v14, %s3266_s23 }
 0x5c6   : > { %1393 = vrot.lane.b32.xlu1 %v3740_v35, %s3267_s7 }
 0x63c   : > { %v1336_v55 = vpop.xlane.xlu0 %1335 }
 0x63d   : > { %2914 = vrcp.f32 %v1336_v55 }
 0x63e   : > { %v1339_v56 = vpop.xlane.xlu1 %1338 }
 0x63f   : > { %2916 = vrcp.f32 %v1339_v56 }
 0x640   : > { %v1347_v57 = vpop.permute.xlu0 %1346 }
 0x641   : > { %2637 = vmatpush3.bf16.msra.mxu1 %v1347_v57 }
 0x642   : > { %2642 = vmatprep.subr.bf16.mxu1 %v3264_v0  ;;  %v1396_v62 = vpop.permute.xlu1 %1395 }
 0x643   : > { %v1401_v1 = vsel %vm1145_vm1, %v1396_v62, 0 }
 0x646   : > { %v1394_v2 = vpop.permute.xlu1 %1393 }
 0x647   : > { %v2915_v58 = vpop.eup %2914 }
 0x648   : > { %v1342_v60 = vmul.f32 %v2915_v58, %v2911_v50 }
 0x649   : > { %v2917_v59 = vpop.eup %2916 }
 0x64a   : > { %v1343_v61 = vmul.f32 %v2917_v59, %v2913_v53 }
 0x64c   : > { %v1344_v63 = vpack.c.bf16 %v1343_v61, %v1342_v60 }
 0x64e   : > { %2639 = vmatmul.mubr.msk.bf16.vlgmr.msra.gmra.mrb[16].mxu1 %vm1197_vm2, %v1344_v63 }
 0x64f   : > { %2643 = vmatpush3.bf16.xpose.msra.mxu1 %v1401_v1  ;;  %2644 = vmatprep.mubr.msk.bf16.mxu1 %vm3265_vm0, %v3264_v0 }
 0x650   : > { %2648 = vmatprep.subr.bf16.mxu1 %v3264_v0 }
 0x656   : > { %2645 = vmatmul.mubr.msk.bf16.vlgmr.msra.gmra.mrb[20].mxu1 %vm1145_vm1, %v1394_v2 }
 0x657   : > { %2650 = vmatprep.mubr.msk.bf16.mxu1 %vm3265_vm0, %v3264_v0 }
 0x721   : > { %v3818_v3 = vpop.f32.mrb[16].mxu1 }
 0x722   : > { %v2640_v4 = vpop.f32.mrb[17].mxu1 }
 0x723   : > { %v3820_v5 = vpop.f32.mrb[18].mxu1 }
 0x724   : > { %v2815_v6 = vpack.i.bf16 %v3820_v5, %v3818_v3  ;;  %v2641_v7 = vpop.f32.mrb[19].mxu1  ;;  %v2854_v3 = vld [vmem:[#allocation11] sm:$0xff]   ;;  %v2855_v5 = vld [vmem:[#allocation11 + $0x8] sm:$0xff]  }
 0x725   : > { %2667 = vmatpush3.bf16.msra.mxu0 %v2854_v3  ;;  %v2887_v3 = vld [vmem:[#allocation14] sm:$0xff]  }
 0x726   : > { %2668 = vmatprep.subr.bf16.mxu0 %v3264_v0 }
 0x729   : > { %v1437_v8 = vpop.f32.mrb[20].mxu1  ;;  %2669 = vmatpush3.bf16.msra.mxu0 %v2855_v5  ;;  %v2888_v5 = vld [vmem:[#allocation14 + $0x48] sm:$0xff]  }
 0x72a   : > { %v1444_v9 = vmul.f32 0.17677669, %v1437_v8  ;;  %v2646_v10 = vpop.f32.mrb[21].mxu1  ;;  %2670 = vmatprep.subr.bf16.mxu0 %v3264_v0 }
 0x72b   : > { %v1440_v11 = vpop.f32.mrb[22].mxu1 }
 0x72c   : > { %v1445_v12 = vmul.f32 0.17677669, %v1440_v11  ;;  %v2647_v13 = vpop.f32.mrb[23].mxu1  ;;  %v1446_v15 = vadd.f32 %v1444_v9, %v3764_v48 }
 0x72e   : > { %v1448_v18 = vsel %vm1197_vm2, %v1446_v15, -inf  ;;  %v1447_v19 = vadd.f32 %v1445_v12, %v3766_v52 }
 0x72f   : > { %1449 = vmax.xlane.f32.xlu1 %v1448_v18 }
 0x730   : > { %v1451_v20 = vsel %vm1197_vm2, %v1447_v19, -inf }
 0x731   : > { %1452 = vmax.xlane.f32.xlu0 %v1451_v20  ;;  %v2858_v20 = vld [vmem:[#allocation11 + $0x20] sm:$0xff]  }
 0x740   : > { %1471 = vrot.lane.b32.xlu1 %v3781_v14, %s3267_s7 }
 0x744   : > { %1518 = vrot.lane.b32.xlu1 %v3740_v35, %s3268_s28 }
 0x7bc   : > { %v1450_v21 = vpop.xlane.xlu1 %1449 }
 0x7bd   : > { %v1454_v22 = vsub.f32 %v1446_v15, %v1450_v21  ;;  %v2859_v21 = vld [vmem:[#allocation11 + $0x28] sm:$0xff]  }
 0x7be   : > { %v1453_v23 = vpop.xlane.xlu0 %1452 }
 0x7bf   : > { %v1456_v24 = vmul.f32 1.442695, %v1454_v22  ;;  %v1455_v25 = vsub.f32 %v1447_v19, %v1453_v23  ;;  %v2860_v22 = vld [vmem:[#allocation11 + $0x30] sm:$0xff]   ;;  %v2861_v23 = vld [vmem:[#allocation11 + $0x38] sm:$0xff]  }
 0x7c0   : > { %v1472_v26 = vpop.permute.xlu1 %1471 }
 0x7c1   : > { %2918 = vpow2.f32 %v1456_v24  ;;  %v1458_v28 = vmul.f32 1.442695, %v1455_v25  ;;  %2649 = vmatpush3.bf16.msra.mxu1 %v1472_v26 }
 0x7c2   : > { %2654 = vmatprep.subr.bf16.mxu1 %v3264_v0 }
 0x7c3   : > { %2920 = vpow2.f32 %v1458_v28 }
 0x7cb   : > { %v2919_v30 = vpop.eup %2918 }
 0x7cc   : > { %v1460_v31 = vsel %vm1197_vm2, %v2919_v30, 0.0 }
 0x7cd   : > { %v2921_v33 = vpop.eup %2920  ;;  %1461 = vadd.xlane.f32.xlu0 %v1460_v31 }
 0x7ce   : > { %v1463_v34 = vsel %vm1197_vm2, %v2921_v33, 0.0 }
 0x7d1   : > { %1464 = vadd.xlane.f32.xlu0 %v1463_v34 }
 0x7e7   : > { %1520 = vrot.lane.b32.xlu0 %v3738_v32, %s3268_s28  ;;  %v1519_v32 = vpop.permute.xlu1 %1518 }
 0x85a   : > { %v1462_v35 = vpop.xlane.xlu0 %1461 }
 0x85b   : > { %2922 = vrcp.f32 %v1462_v35 }
 0x85e   : > { %v1465_v36 = vpop.xlane.xlu0 %1464 }
 0x85f   : > { %2924 = vrcp.f32 %v1465_v36 }
 0x862   : > { %v1521_v41 = vpop.permute.xlu0 %1520 }
 0x863   : > { %v1526_v43 = vsel %vm1145_vm1, %v1521_v41, 0 }
 0x865   : > { %v2923_v37 = vpop.eup %2922 }
 0x866   : > { %v1468_v39 = vmul.f32 %v2923_v37, %v2919_v30 }
 0x869   : > { %v2925_v38 = vpop.eup %2924 }
 0x86a   : > { %v1469_v40 = vmul.f32 %v2925_v38, %v2921_v33 }
 0x86c   : > { %v1470_v42 = vpack.c.bf16 %v1469_v40, %v1468_v39 }
 0x86e   : > { %2651 = vmatmul.mubr.msk.bf16.vlgmr.msra.gmra.mrb[24].mxu1 %vm1197_vm2, %v1470_v42 }
 0x86f   : > { %2655 = vmatpush3.bf16.xpose.msra.mxu1 %v1526_v43  ;;  %2656 = vmatprep.mubr.msk.bf16.mxu1 %vm3265_vm0, %v3264_v0 }
 0x870   : > { %2660 = vmatprep.subr.bf16.mxu1 %v3264_v0 }
 0x876   : > { %2657 = vmatmul.mubr.msk.bf16.vlgmr.msra.gmra.mrb[28].mxu1 %vm1145_vm1, %v1519_v32 }
 0x877   : > { %2662 = vmatprep.mubr.msk.bf16.mxu1 %vm3265_vm0, %v3264_v0 }
 0x941   : > { %v1511_v44 = vpop.f32.mrb[24].mxu1 }
 0x942   : > { %v2652_v45 = vpop.f32.mrb[25].mxu1 }
 0x943   : > { %v1514_v46 = vpop.f32.mrb[26].mxu1 }
 0x944   : > { %v2820_v47 = vpack.i.bf16 %v1514_v46, %v1511_v44  ;;  %v2653_v49 = vpop.f32.mrb[27].mxu1  ;;  %v2431_v46 = vld [vmem:[%s3966_s10] ss:$0 sm:$0xff] }
 0x949   : > { %v1562_v50 = vpop.f32.mrb[28].mxu1 }
 0x94a   : > { %v1569_v51 = vmul.f32 0.17677669, %v1562_v50  ;;  %v2658_v53 = vpop.f32.mrb[29].mxu1 }
 0x94b   : > { %v1565_v54 = vpop.f32.mrb[30].mxu1 }
 0x94c   : > { %v1570_v55 = vmul.f32 0.17677669, %v1565_v54  ;;  %v2659_v56 = vpop.f32.mrb[31].mxu1  ;;  %v1571_v57 = vadd.f32 %v1569_v51, %v3764_v48 }
 0x94d   : > { %v2864_v56 = vld [vmem:[#allocation13 + $0x4] ss:$8 sps:$4 sm:$0xff]  }
 0x94e   : > { %v1573_v58 = vsel %vm1197_vm2, %v1571_v57, -inf  ;;  %v1572_v59 = vadd.f32 %v1570_v55, %v3766_v52  ;;  %v2862_v55 = vld [vmem:[#allocation13] ss:$8 sps:$4 sm:$0xff]  }
 0x94f   : > { %1574 = vmax.xlane.f32.xlu1 %v1573_v58  ;;  %v2865_v58 = vld [vmem:[#allocation13 + $0x10] ss:$8 sps:$4 sm:$0xff]  }
 0x950   : > { %v1576_v60 = vsel %vm1197_vm2, %v1572_v59, -inf }
 0x951   : > { %1577 = vmax.xlane.f32.xlu0 %v1576_v60 }
 0x9dc   : > { %v1575_v61 = vpop.xlane.xlu1 %1574 }
 0x9dd   : > { %v1579_v62 = vsub.f32 %v1571_v57, %v1575_v61  ;;  %v2867_v57 = vld [vmem:[#allocation13 + $0x14] ss:$8 sps:$4 sm:$0xff]  }
 0x9de   : > { %v1578_v63 = vpop.xlane.xlu0 %1577 }
 0x9df   : > { %v1581_v1 = vmul.f32 1.442695, %v1579_v62  ;;  %v1580_v2 = vsub.f32 %v1572_v59, %v1578_v63 }
 0x9e1   : > { %2926 = vpow2.f32 %v1581_v1  ;;  %v1583_v4 = vmul.f32 1.442695, %v1580_v2  ;;  %v2870_v2 = vld [vmem:[#allocation13 + $0x24] ss:$8 sps:$4 sm:$0xff]  }
 0x9e3   : > { %2928 = vpow2.f32 %v1583_v4  ;;  %v2868_v4 = vld [vmem:[#allocation13 + $0x20] ss:$8 sps:$4 sm:$0xff]  }
 0x9eb   : > { %v2927_v7 = vpop.eup %2926 }
 0x9ec   : > { %v1585_v8 = vsel %vm1197_vm2, %v2927_v7, 0.0 }
 0x9ed   : > { %v2929_v48 = vpop.eup %2928  ;;  %1586 = vadd.xlane.f32.xlu0 %v1585_v8  ;;  %v2871_v8 = vld [vmem:[#allocation13 + $0x30] ss:$8 sps:$4 sm:$0xff]  }
 0x9ee   : > { %v1588_v9 = vsel %vm1197_vm2, %v2929_v48, 0.0 }
 0x9ef   : > { %1589 = vadd.xlane.f32.xlu1 %v1588_v9  ;;  %v2874_v9 = vld [vmem:[#allocation13 + $0x40] ss:$8 sps:$4 sm:$0xff]  }
 0xa00   : > { %2816 = vrot.lane.b32.xlu1 %v2815_v6, %s3268_s28  ;;  %v2857_v6 = vld [vmem:[#allocation11 + $0x18] sm:$0xff]  }
 0xa03   : > { %1596 = vrot.lane.b32.xlu0 %v3781_v14, %s3268_s28  ;;  %v2856_v14 = vld [vmem:[#allocation11 + $0x10] sm:$0xff]   ;;  %s4040_s28 = sld [smem:[#allocation37_spill]] }
 0xa04   : > { %2821 = vrot.lane.b32.xlu1 %v2820_v47, %s3267_s7  ;;  %2671 = vmatpush3.bf16.msra.mxu0 %v2856_v14  ;;  %v2889_v14 = vld [vmem:[#allocation14 + $0x8] sm:$0xff]  }
 0xa05   : > { %2672 = vmatprep.subr.bf16.mxu0 %v3264_v0 }
 0xa08   : > { %2673 = vmatpush3.bf16.msra.mxu0 %v2857_v6  ;;  %v2890_v6 = vld [vmem:[#allocation14 + $0x50] sm:$0xff]  }
 0xa09   : > { %2674 = vmatprep.subr.bf16.mxu0 %v3264_v0 }
 0xa0c   : > { %2675 = vmatpush3.bf16.msra.mxu0 %v2858_v20  ;;  %v2891_v20 = vld [vmem:[#allocation14 + $0x10] sm:$0xff]  }
 0xa0d   : > { %2676 = vmatprep.subr.bf16.mxu0 %v3264_v0 }
 0xa10   : > { %2677 = vmatpush3.bf16.msra.mxu0 %v2859_v21  ;;  %v2892_v21 = vld [vmem:[#allocation14 + $0x58] sm:$0xff]  }
 0xa11   : > { %2678 = vmatprep.subr.bf16.mxu0 %v3264_v0 }
 0xa14   : > { %2679 = vmatpush3.bf16.msra.mxu0 %v2860_v22  ;;  %v2893_v22 = vld [vmem:[#allocation14 + $0x18] sm:$0xff]  }
 0xa15   : > { %2680 = vmatprep.subr.bf16.mxu0 %v3264_v0 }
 0xa18   : > { %2681 = vmatpush3.bf16.msra.mxu0 %v2861_v23  ;;  %v2894_v23 = vld [vmem:[#allocation14 + $0x60] sm:$0xff]  }
 0xa7a   : > { %v1587_v52 = vpop.xlane.xlu0 %1586 }
 0xa7b   : > { %2930 = vrcp.f32 %v1587_v52  ;;  %v2879_v52 = vld [vmem:[#allocation13 + $0x54] ss:$8 sps:$4 sm:$0xff]  }
 0xa7c   : > { %v1590_v10 = vpop.xlane.xlu1 %1589 }
 0xa7d   : > { %2932 = vrcp.f32 %v1590_v10  ;;  %v2877_v10 = vld [vmem:[#allocation13 + $0x50] ss:$8 sps:$4 sm:$0xff]  }
 0xa7e   : > { %v1597_v11 = vpop.permute.xlu0 %1596 }
 0xa7f   : > { %2661 = vmatpush3.bf16.msra.mxu1 %v1597_v11  ;;  %v2882_v11 = vld [vmem:[#allocation13 + $0x64] ss:$8 sps:$4 sm:$0xff]  }
 0xa80   : > { %v2817_v31 = vpop.permute.xlu1 %2816  ;;  %1940 = vmatprep.subr.bf16.mxu1 %v2864_v56 }
 0xa81   : > { %v2819_v34 = vunpack.i.h.bf16 %v2817_v31  ;;  %v2818_v35 = vunpack.i.l.bf16 %v2817_v31 }
 0xa83   : > { %v1668_v0 = vsel %vm1145_vm1, %v3795_v29, %v2819_v34  ;;  %v1667_v39 = vsel %vm1145_vm1, %v3793_v27, %v2818_v35 }
 0xa84   : > { %v2822_v33 = vpop.permute.xlu1 %2821 }
 0xa85   : > { %v2931_v12 = vpop.eup %2930  ;;  %v2824_v36 = vunpack.i.h.bf16 %v2822_v33  ;;  %v2823_v37 = vunpack.i.l.bf16 %v2822_v33 }
 0xa86   : > { %v1593_v15 = vmul.f32 %v2931_v12, %v2927_v7  ;;  %v2873_v7 = vld [vmem:[#allocation13 + $0x34] ss:$8 sps:$4 sm:$0xff]   ;;  %v2880_v12 = vld [vmem:[#allocation13 + $0x60] ss:$8 sps:$4 sm:$0xff]  }
 0xa87   : > { %v2933_v13 = vpop.eup %2932  ;;  %v1670_v42 = vsel %vm1669_vm3, %v1667_v39, %v2823_v37  ;;  %v1671_v43 = vsel %vm1669_vm3, %v1668_v0, %v2824_v36  ;;  %v2440_v37 = vld [vmem:[%s4034_s30] ss:$0 sm:$0xff] }
 0xa88   : > { %v1594_v18 = vmul.f32 %v2933_v13, %v2929_v48  ;;  %v2876_v48 = vld [vmem:[#allocation13 + $0x44] ss:$8 sps:$4 sm:$0xff]   ;;  %v2885_v13 = vld [vmem:[#allocation13 + $0x74] ss:$8 sps:$4 sm:$0xff]  }
 0xa8a   : > { %v1595_v19 = vpack.c.bf16 %v1594_v18, %v1593_v15  ;;  %v2883_v15 = vld [vmem:[#allocation13 + $0x70] ss:$8 sps:$4 sm:$0xff]   ;;  %v3269_v18 = vmov 0  }
 0xa8c   : > { %2663 = vmatmul.mubr.msk.bf16.vlgmr.msra.gmra.mrb[32].mxu1 %vm1197_vm2, %v1595_v19  ;;  %v2886_v19 = vld [vmem:[#allocation14 + $0x40] sm:$0xff]  }
 0xa8d   : > { %1941 = vmatpush1.bf16.msra.mxu1 %v2862_v55  ;;  %1972 = vmatprep.mubr.bf16.mxu1 %v3269_v18 }
 0xa8e   : > { %1942 = vmatprep.subr.bf16.mxu1 %v2867_v57  ;;  %2536 = vmatprep.subr.bf16.mxu0 %v2886_v19 }
 0xa91   : > { %1943 = vmatpush1.bf16.msra.mxu1 %v2865_v58 }
 0xa92   : > { %1944 = vmatprep.subr.bf16.mxu1 %v2870_v2 }
 0xa95   : > { %1945 = vmatpush1.bf16.msra.mxu1 %v2868_v4 }
 0xa96   : > { %1946 = vmatprep.subr.bf16.mxu1 %v2873_v7 }
 0xa99   : > { %1947 = vmatpush1.bf16.msra.mxu1 %v2871_v8 }
 0xa9a   : > { %1948 = vmatprep.subr.bf16.mxu1 %v2876_v48  ;;  %v2458_v48 = vld [vmem:[%s4037_s5] ss:$0 sm:$0xff] }
 0xa9d   : > { %1949 = vmatpush1.bf16.msra.mxu1 %v2874_v9 }
 0xa9e   : > { %1950 = vmatprep.subr.bf16.mxu1 %v2879_v52 }
 0xaa1   : > { %1951 = vmatpush1.bf16.msra.mxu1 %v2877_v10 }
 0xaa2   : > { %1952 = vmatprep.subr.bf16.mxu1 %v2882_v11 }
 0xaa5   : > { %1953 = vmatpush1.bf16.msra.mxu1 %v2880_v12 }
 0xaa6   : > { %1954 = vmatprep.subr.bf16.mxu1 %v2885_v13 }
 0xaa9   : > { %1955 = vmatpush1.bf16.msra.mxu1 %v2883_v15 }
 0xb5f   : > { %v1636_v24 = vpop.f32.mrb[32].mxu1 }
 0xb60   : > { %v2664_v25 = vpop.f32.mrb[33].mxu1 }
 0xb61   : > { %v1639_v26 = vpop.f32.mrb[34].mxu1  ;;  %v2896_v25 = vld [vmem:[#allocation14 + $0x68] sm:$0xff]  }
 0xb62   : > { %v2825_v28 = vpack.i.bf16 %v1639_v26, %v1636_v24  ;;  %v2665_v30 = vpop.f32.mrb[35].mxu1  ;;  %v2895_v24 = vld [vmem:[#allocation14 + $0x20] sm:$0xff]  }
 0xb64   : > { %2826 = vrot.lane.b32.xlu1 %v2825_v28, %s3266_s23  ;;  %s787_s23 = scalar_lea.vmem [#allocation16], %s2386_s0  ;;  %s3270_s0 = smov [#allocation16]  }
 0xb65   : > { %s2223_s20 = sshll.u32 %s787_s23, 4  ;;  %s3172_s12 = sshll.u32 %s3270_s0, 4  ;;  %s3912_s20 = int_to_ptr.vmem [resolvable:$true] %s2223_s20  ;;  %s3173_s12 = int_to_ptr.vmem [resolvable:$false] %s3172_s12 }
 0xb66   : > { %p3175_p8 = scmp.lt.s32.totalorder %s3912_s20, %s3173_s12 }
 0xbd6   : > { %v2827_v38 = vpop.permute.xlu1 %2826 }
 0xbd7   : > { %v2829_v40 = vunpack.i.h.bf16 %v2827_v38  ;;  %v2828_v41 = vunpack.i.l.bf16 %v2827_v38 }
 0xbd9   : > { %v1674_v32 = vsel %vm1672_vm4, %v1671_v43, %v2829_v40  ;;  %v1673_v44 = vsel %vm1672_vm4, %v1670_v42, %v2828_v41  ;;  %v2441_v40 = vld [vmem:[%s4035_s24] ss:$0 sm:$0xff]  ;;  %s2483_s24 = sshll.u32 %s3404_s3, 8  ;;  %s3168_s3 = scalar_lea.vmem %s3912_s20, 256 }
 0xbda   : > { %v1675_v45 = vpack.c.bf16 %v1674_v32, %v1673_v44  ;;  %v2897_v44 = vld [vmem:[#allocation14 + $0x28] sm:$0xff]   ;;  %s3910_s5 = scalar_lea.hbm %s4040_s28, %s2483_s24  ;;  %p3169_p1 = scmp.ne.s32.totalorder %s3912_s20, %s3168_s3 }
 0xbdc   : > { %2683 = vmatmul.mubr.bf16.vlgmr.msra.gmra.mrb[8].mxu0 %v1675_v45  ;;  %v2898_v45 = vld [vmem:[#allocation14 + $0x70] sm:$0xff]   ;;  %p3170_p12 = pnand %p3169_p1, %p4041_p11 }
 0xbdd   : > { %2537 = vmatpush3.bf16.msra.mxu0 %v2887_v3 }
 0xbde   : > { %2538 = vmatprep.subr.bf16.mxu0 %v2888_v5  ;;  %p3171_p13 = pneg %p3170_p12 }
 0xbe1   : > { %2539 = vmatpush3.bf16.msra.mxu0 %v2889_v14 }
 0xbe2   : > { %2540 = vmatprep.subr.bf16.mxu0 %v2890_v6 }
 0xbe5   : > { %2541 = vmatpush3.bf16.msra.mxu0 %v2891_v20 }
 0xbe6   : > { %2542 = vmatprep.subr.bf16.mxu0 %v2892_v21 }
 0xbe9   : > { %2543 = vmatpush3.bf16.msra.mxu0 %v2893_v22 }
 0xbea   : > { %2544 = vmatprep.subr.bf16.mxu0 %v2894_v23 }
 0xbed   : > { %2545 = vmatpush3.bf16.msra.mxu0 %v2895_v24 }
 0xbee   : > { %2546 = vmatprep.subr.bf16.mxu0 %v2896_v25 }
 0xbf1   : > { %2547 = vmatpush3.bf16.msra.mxu0 %v2897_v44 }
 0xbf2   : > { %2548 = vmatprep.subr.bf16.mxu0 %v2898_v45 }
 0xcaf   : > { %v1781_v47 = vpop.f32.mrb[8].mxu0 }
 0xcb0   : > { %v1782_v49 = vadd.f32 %v2431_v46, %v1781_v47  ;;  %v2684_v50 = vpop.f32.mrb[9].mxu0  ;;  %v2900_v47 = vld [vmem:[#allocation14 + $0x78] sm:$0xff]  }
 0xcb1   : > { %v1784_v51 = vpop.f32.mrb[10].mxu0  ;;  %v1850_v50 = vlaneseq }
 0xcb2   : > { %v1785_v29 = vadd.f32 %v2431_v46, %v1784_v51  ;;  %v2685_v53 = vpop.f32.mrb[11].mxu0  ;;  %v1788_v27 = vadd.f32 %v1782_v49, %v3716_v16  ;;  %v2899_v46 = vld [vmem:[#allocation14 + $0x30] sm:$0xff]   ;;  %v2901_v49 = vld [vmem:[#allocation14 + $0x38] sm:$0xff]  }
 0xcb3   : > { %2549 = vmatpush3.bf16.msra.mxu0 %v2899_v46  ;;  %v1851_v51 = vshrl.u32 %v1850_v50, 7  ;;  %v1848_v53 = vld [vmem:[%s4036_s18] sm:$0x3] }
 0xcb4   : > { %1792 = vadd.xlane.f32.xlu0 %v1788_v27  ;;  %v1789_v54 = vadd.f32 %v1785_v29, %v3719_v17  ;;  %2550 = vmatprep.subr.bf16.mxu0 %v2900_v47 }
 0xcb5   : > { %v1852_v29 = vsub.s32 0, %v1851_v51 }
 0xcb6   : > { %1794 = vadd.xlane.f32.xlu1 %v1789_v54 }
 0xcb7   : > { %2551 = vmatpush3.bf16.msra.mxu0 %v2901_v49 }
 0xd41   : > { %v1793_v59 = vpop.xlane.xlu0 %1792 }
 0xd42   : > { %v1797_v60 = vmul.f32 0.0078125, %v1793_v59 }
 0xd43   : > { %v1795_v61 = vpop.xlane.xlu1 %1794 }
 0xd44   : > { %v3876_v62 = vsub.f32 %v1788_v27, %v1797_v60  ;;  %v1798_v63 = vmul.f32 0.0078125, %v1795_v61  ;;  %v1856_v27 = vsub.s32 1, %v1851_v51 }
 0xd46   : > { %v3878_v1 = vsub.f32 %v1789_v54, %v1798_v63  ;;  %v1801_v16 = vmul.f32 %v3876_v62, %v3876_v62  ;;  %v1853_v54 = vrot.slane %v1848_v53, %v1852_v29  ;;  %v1857_v55 = vrot.slane %v1848_v53, %v1856_v27 }
 0xd48   : > { %1803 = vadd.xlane.f32.xlu0 %v1801_v16  ;;  %v1802_v17 = vmul.f32 %v3878_v1, %v3878_v1 }
 0xd4c   : > { %1805 = vadd.xlane.f32.xlu0 %v1802_v17 }
 0xdd5   : > { %v1804_v26 = vpop.xlane.xlu0 %1803 }
 0xdd6   : > { %v1807_v28 = vmul.f32 0.0078125, %v1804_v26 }
 0xdd8   : > { %v1809_v30 = vadd.f32 1e-05, %v1807_v28 }
 0xdd9   : > { %v1806_v31 = vpop.xlane.xlu0 %1805 }
 0xdda   : > { %2934 = vrsqrt.f32 %v1809_v30  ;;  %v1808_v33 = vmul.f32 0.0078125, %v1806_v31 }
 0xddc   : > { %v1810_v34 = vadd.f32 1e-05, %v1808_v33 }
 0xdde   : > { %2936 = vrsqrt.f32 %v1810_v34  ;;  %v2475_v34 = vld [vmem:[%s4038_s16] ss:$0 sm:$0xff]  ;;  %s3174_s16 = scalar_lea.vmem %s3173_s12, 512 }
 0xddf   : > { %p3176_p6 = scmp.lt.s32.totalorder %s3174_s16, %s3168_s3 }
 0xde1   : > { %p3177_p9 = por %p3176_p6, %p3175_p8 }
 0xde3   : > { %p3178_p4 = pnand %p3177_p9, %p3171_p13 }
 0xde4   : > { %v2935_v35 = vpop.eup %2934 }
 0xde5   : > { %v1813_v36 = vmul.f32 %v2935_v35, %v3876_v62 }
 0xde7   : > { %v1821_v39 = vmul.f32 %v2440_v37, %v1813_v36 }
 0xde8   : > { %v2937_v38 = vpop.eup %2936 }
 0xde9   : > { %v1814_v0 = vmul.f32 %v2937_v38, %v3878_v1  ;;  %v1829_v42 = vadd.f32 %v2441_v40, %v1821_v39 }
 0xdeb   : > { %v1822_v41 = vmul.f32 %v2440_v37, %v1814_v0  ;;  %v2476_v37 = vld [vmem:[%s4039_s4] ss:$0 sm:$0xff] }
 0xded   : > { %v1830_v43 = vadd.f32 %v2441_v40, %v1822_v41 }
 0xdef   : > { %v1831_v32 = vpack.c.bf16 %v1830_v43, %v1829_v42 }
 0xdf1   : > { %1973 = vmatmul.mubr.bf16.vlgmr.msra.gmra.mrb[36].mxu1 %v1831_v32 }
 0xec4   : > { %v1974_v56 = vpop.f32.mrb[36].mxu1 }
 0xec5   : > { %v1975_v57 = vadd.f32 %v1974_v56, %v1853_v54  ;;  %v1976_v58 = vpop.f32.mrb[37].mxu1 }
 0xec6   : > { %v1977_v59 = vadd.f32 %v1976_v58, %v1857_v55  ;;  %v1978_v60 = vpop.f32.mrb[38].mxu1 }
 0xec7   : > { %v1979_v61 = vadd.f32 %v1978_v60, %v1853_v54  ;;  %v1980_v62 = vpop.f32.mrb[39].mxu1  ;;  %v1983_v1 = vmax.f32 %v1975_v57, 0.0 }
 0xec8   : > { %v1981_v63 = vadd.f32 %v1980_v62, %v1857_v55  ;;  %v1984_v17 = vmax.f32 %v1977_v59, 0.0 }
 0xec9   : > { %v1985_v16 = vmax.f32 %v1979_v61, 0.0 }
 0xeca   : > { %v1986_v2 = vmax.f32 %v1981_v63, 0.0 }
 0xecb   : > { %v1987_v4 = vpack.c.bf16 %v1985_v16, %v1983_v1 }
 0xecc   : > { %v1988_v7 = vpack.c.bf16 %v1986_v2, %v1984_v17 }
 0xece   : > { %2156 = vmatprep.mubr.bf16.mxu0 %v1988_v7 }
 0xecf   : > { %2157 = vmatmul.mubr.bf16.vlgmr.msra.gmra.mrb[12].mxu0 %v1987_v4 }
 0xfa2   : > { %v2552_v8 = vpop.f32.mrb[12].mxu0 }
 0xfa3   : > { %v2553_v9 = vpop.f32.mrb[13].mxu0 }
 0xfa4   : > { %v2554_v52 = vadd.f32 %v2553_v9, %v2552_v8  ;;  %v2555_v10 = vpop.f32.mrb[14].mxu0 }
 0xfa5   : > { %v2556_v11 = vpop.f32.mrb[15].mxu0 }
 0xfa6   : > { %v2159_v12 = vadd.f32 %v2554_v52, %v2458_v48  ;;  %v2557_v13 = vadd.f32 %v2556_v11, %v2555_v10 }
 0xfa8   : > { %v2162_v15 = vadd.f32 %v2557_v13, %v2458_v48  ;;  %v2165_v18 = vadd.f32 %v2159_v12, %v1829_v42 }
 0xfaa   : > { %2169 = vadd.xlane.f32.xlu0 %v2165_v18  ;;  %v2166_v19 = vadd.f32 %v2162_v15, %v1830_v43 }
 0xfac   : > { %2171 = vadd.xlane.f32.xlu1 %v2166_v19 }
0x1037   : > { %v2170_v3 = vpop.xlane.xlu0 %2169 }
0x1038   : > { %v2173_v5 = vmul.f32 0.0078125, %v2170_v3 }
0x1039   : > { %v2172_v14 = vpop.xlane.xlu1 %2171 }
0x103a   : > { %v2175_v6 = vsub.f32 %v2165_v18, %v2173_v5  ;;  %v2174_v20 = vmul.f32 0.0078125, %v2172_v14 }
0x103c   : > { %v2176_v21 = vsub.f32 %v2166_v19, %v2174_v20  ;;  %v2177_v22 = vmul.f32 %v2175_v6, %v2175_v6 }
0x103e   : > { %2179 = vadd.xlane.f32.xlu0 %v2177_v22  ;;  %v2178_v23 = vmul.f32 %v2176_v21, %v2176_v21 }
0x1040   : > { %2181 = vadd.xlane.f32.xlu1 %v2178_v23 }
0x10cb   : > { %v2180_v24 = vpop.xlane.xlu0 %2179 }
0x10cc   : > { %v2183_v25 = vmul.f32 0.0078125, %v2180_v24 }
0x10cd   : > { %v2182_v26 = vpop.xlane.xlu1 %2181 }
0x10ce   : > { %v2185_v28 = vadd.f32 1e-05, %v2183_v25  ;;  %v2184_v30 = vmul.f32 0.0078125, %v2182_v26 }
0x10d0   : > { %2938 = vrsqrt.f32 %v2185_v28  ;;  %v2186_v31 = vadd.f32 1e-05, %v2184_v30 }
0x10d2   : > { %2940 = vrsqrt.f32 %v2186_v31 }
0x10da   : > { %v2939_v33 = vpop.eup %2938 }
0x10db   : > { %v2189_v35 = vmul.f32 %v2939_v33, %v2175_v6 }
0x10dc   : > { %v2941_v36 = vpop.eup %2940 }
0x10dd   : > { %v2197_v38 = vmul.f32 %v2475_v34, %v2189_v35  ;;  %v2190_v0 = vmul.f32 %v2941_v36, %v2176_v21 }
0x10df   : > { %v2205_v39 = vadd.f32 %v2476_v37, %v2197_v38  ;;  %v2198_v40 = vmul.f32 %v2475_v34, %v2190_v0 }
0x10e1   : > { %v2206_v41 = vadd.f32 %v2476_v37, %v2198_v40  ;;  %2207 = vst [vmem:[%s787_s23] sm:$0xff] %v2205_v39 }
0x10e3   : > { %2208 = vst [vmem:[%s787_s23 + $0x8] sm:$0xff] %v2206_v41 }
0x10e4   : > { %3181 = shalt.err (!%p3178_p4)
}
0x10e5   : > { %s3182_s30 = scalar_lea.hbm %s3910_s5, 256  ;;  %s3186_s24 = scalar_lea.hbm %s4040_s28, 512 }
0x10e6   : > { %p3183_p3 = scmp.ne.s32.totalorder %s3910_s5, %s3182_s30  ;;  %p3187_p2 = scmp.lt.u32.totalorder %s3910_s5, %s4040_s28 }
0x10e7   : > { %p3188_p7 = scmp.lt.u32.totalorder %s3186_s24, %s3182_s30  ;;  %p3190_p1 = scmp.lt.u32.totalorder %s3182_s30, %s3910_s5 }
0x10e8   : > { %p3184_p0 = pnand %p3183_p3, %p4041_p11 }
0x10e9   : > { %p3189_p10 = por %p3188_p7, %p3187_p2 }
0x10ea   : > { %p3185_p5 = pneg %p3184_p0 }
0x10eb   : > { %p3191_p12 = por %p3190_p1, %p3189_p10 }
0x10ed   : > { %p3192_p13 = pnand %p3191_p12, %p3185_p5 }
0x10ef   : > { %3195 = shalt.err (!%p3192_p13)
}
0x10f0   : > { %s3271_s7 = smov 128   ;;  %s3272_s3 = smov 8  }
0x10f1   : > { %2716 = dma.vmem_to_hbm [thread:$0]  (%p4041_p11), %s3912_s20, 256, %s3910_s5, %s2210_s17, %s3271_s7, %s3271_s7, %s3272_s3  }
0x10f2 PF: > { %s2238_s0 = sand.u32 1, %s3238_s2   ;;  %p4042_p8 = scmp.ne.s32.totalorder %s4020_s22, 0 }
0x10f3   : > { %p4043_p6 = scmp.ge.s32.totalorder %s3250_s19, 2  ;;  %s2239_s12 = scalar_lea.sflag [#allocation4], %s2238_s0 }
0x10f5   : > { %p2745_p9 = pnand %p4043_p6, %p4042_p8 }
0x10f7   : > { %3233 = dma.done.wait (!%p2745_p9), %s2239_s12, 256  }
0x10f8   : > { %3235 = vsyncadd (!%p2745_p9), %s2239_s12, 4294967040  ;;  %p38_p4 = scmp.ge.s32.totalorder %s3594_s29, 4   ;;  %s4044_s2 = smov %s3242_s25 }
0x10f9   : > { %s4045_s25 = smov %s3246_s26  ;;  %s4046_s26 = smov %s3606_s21 }
0x10fa   : > { %s4047_s19 = smov %s3594_s29  ;;  %40 = sbr.rel (!%p38_p4) target bundleno = 25 (0x19), region = 180 }
0x1101   :  { %2244 = vsyncpa [#allocation3], 1 }
0x1102   :  { %2246 = vsyncpa [#allocation3 + $0x1], 1 }
0x1103   :  { %2247 = vsyncpa [#allocation6], 1 }
0x1104   :  { %2248 = vsyncpa [#allocation9], 1 }
0x1105   :  { %2249 = vsyncpa [#allocation12], 1 }
0x1106   :  { %2250 = vsyncpa [#allocation15], 1 }
0x1107   :  { %2251 = vsyncpa [#allocation4], 1 }
0x1108   :  { %2253 = vsyncpa [#allocation4 + $0x1], 1 }

</bundles_post_ra>
